<compile_context>
chip_gen: v6e
topology: v6e:2x2x1
jax: 0.10.0
libtpu: 0.0.40
codegen_flags: <defaults>
</compile_context>

<pallas_src>
import numpy as np
import jax
import jax.numpy as jnp
from jax.experimental import pallas as pl
from jax.experimental.pallas import tpu as pltpu


LANES = 128


# ----------------------------------------------------------------------------
# Host-side one-time weight packing (im2col folded into the conv weights).
# ----------------------------------------------------------------------------
def _pack_conv(w_conv, b_conv, W, k_pad):
    """Pack a torch-layout Conv2d(3x3, pad=1) weight for the fused kernel.

    Returns:
      wbig: (3, k_pad, 2*Wo*Cout) bf16.  For row tap ky it maps one padded input
            row slab (lanes = (w_in, c), zero-padded to k_pad) to conv outputs with
            lanes ordered (px, wo, co), conv column w = 2*wo + px.  The 2x2-pool
            column offset px lives in the lane dim, so the W-pool is a max of the
            two 128-lane halves of the matmul output.
      bbig: (1, Wo*Cout) f32, bias tiled over wo (added once, after both pools).
    """
    Cout, Cin, KH, KW = (int(d) for d in w_conv.shape)
    assert (KH, KW) == (3, 3) and W % 2 == 0
    Wo = W // 2
    sel = np.zeros((KW, W, 2, Wo), np.float32)
    for kx in range(KW):
        for px in range(2):
            for wo in range(Wo):
                j = 2 * wo + px + kx - 1          # input column tapped (pad = 1)
                if 0 <= j < W:                    # out-of-range taps hit zero pad
                    sel[kx, j, px, wo] = 1.0
    wbig = jnp.einsum('kjpw,ocyk->yjcpwo', jnp.asarray(sel),
                      w_conv.astype(jnp.float32))
    wbig = wbig.reshape(KH, W * Cin, 2 * Wo * Cout)
    if k_pad > W * Cin:                           # zero-pad K so the MXU sees 128 lanes
        wbig = jnp.pad(wbig, ((0, 0), (0, k_pad - W * Cin), (0, 0)))
    bbig = jnp.tile(b_conv.astype(jnp.float32), Wo).reshape(1, Wo * Cout)
    return wbig.astype(jnp.bfloat16), bbig


def pack_params(params, H0, W0, Cin0):
    """Pack all weights once (bf16).  Returns (flat operand tuple, cfgs, head_hw)."""
    cfgs, ws, bs = [], [], []
    H, W, C = H0, W0, Cin0
    for (w, b) in params["convs"]:
        Cout = int(w.shape[0])
        assert int(w.shape[1]) == C and H % 2 == 0 and W % 2 == 0
        k_pad = max(LANES, W * C)
        assert k_pad % LANES == 0 and (W // 2) * Cout == LANES, "needs 128-lane stages"
        wbig, bbig = _pack_conv(w, b, W, k_pad)
        ws.append(wbig); bs.append(bbig)
        cfgs.append((H, W, C, Cout, k_pad))
        H, W, C = H // 2, W // 2, Cout
    Ho3, Wo3 = H, W                               # spatial size after the last pool
    # Fold AdaptiveAvgPool2d((1,1))'s 1/(Ho*Wo) mean into the FC weight; rows ordered
    # (wo, co) to match the pooled-row lane layout of the last stage.
    fcw = jnp.concatenate([params["fc_w"].T.astype(jnp.float32)] * Wo3, axis=0)
    fcw = (fcw / float(Ho3 * Wo3)).astype(jnp.bfloat16)          # (Wo3*C_last, out_dim)
    fcb = params["fc_b"].astype(jnp.float32).reshape(1, -1)
    # Operand order must match in_specs: w1, b1, b2, b3, fcb are auto-DMA'd blocked
    # inputs; w2, w3, fcw stay in HBM and are manually prefetched in-kernel.
    packed = (ws[0], bs[0], bs[1], bs[2], fcb, ws[1], ws[2], fcw)
    return packed, tuple(cfgs), (Ho3, Wo3)


# ----------------------------------------------------------------------------
# The single fused Pallas kernel.
# ----------------------------------------------------------------------------
def _build_fused_call(N, cfgs, head_hw, out_dim):
    (H1, W1, C1, O1, K1), (H2, W2, C2, O2, K2), (H3, W3, C3, O3, K3) = cfgs
    Hp1, Hp2, Hp3 = H1 + 2, H2 + 2, H3 + 2
    Ho1, Ho2, Ho3 = H1 // 2, H2 // 2, H3 // 2
    Wo1, Wo2, Wo3 = W1 // 2, W2 // 2, W3 // 2
    assert K2 == Wo1 * O1 and K3 == Wo2 * O2 and head_hw == (Ho3, Wo3)
    wide1, wide2, wide3 = 2 * Wo1 * O1, 2 * Wo2 * O2, 2 * Wo3 * O3

    def kernel(a1_ref, w1_ref, b1_ref, b2_ref, b3_ref, fcb_ref,
               w2_hbm, w3_hbm, fcw_hbm, o_ref,
               a2_ref, a3_ref, w2_vm, w3_vm, fcw_vm, sem):
        # Prefetch stage-2/3 + head weights: their HBM->VMEM DMA overlaps stage-1
        # compute (with grid=(1,) the auto-pipeline would otherwise serialize it).
        cp_w2 = pltpu.make_async_copy(w2_hbm, w2_vm, sem.at[0]); cp_w2.start()
        cp_w3 = pltpu.make_async_copy(w3_hbm, w3_vm, sem.at[1]); cp_w3.start()
        cp_fc = pltpu.make_async_copy(fcw_hbm, fcw_vm, sem.at[2]); cp_fc.start()

        # Zero only the per-image border rows of the padded inter-stage buffers;
        # every interior row is overwritten by the per-image stage stores below.
        zrow2 = jnp.zeros((1, K2), jnp.float32)
        zrow3 = jnp.zeros((1, K3), jnp.float32)
        for n in range(N):
            a2_ref[pl.ds(n * Hp2, 1), :] = zrow2
            a2_ref[pl.ds(n * Hp2 + H2 + 1, 1), :] = zrow2
            a3_ref[pl.ds(n * Hp3, 1), :] = zrow3
            a3_ref[pl.ds(n * Hp3 + H3 + 1, 1), :] = zrow3

        def stage(a_ref, w_ref, b_ref, H, Wo, Cout):
            """Conv2d(3x3,pad=1)+ReLU+MaxPool2d(2) over the whole batch, vectorized.

            a_ref rows per image n: n*(H+2) = zero top pad, +1..+H = data rows,
            +H+1 = zero bottom pad.  Conv output row y reads rows n*(H+2)+y+{0,1,2}.
            Conv rows are split by parity (even y=2*ho / odd y=2*ho+1) via stride-2
            ref loads, so MaxPool along H is an elementwise max of two slabs -- no
            per-row loop and no scratch.  Returns the pooled slab
            (N*(Ho+1)-1, Wo*Cout) f32; image n's Ho pooled rows sit at slab rows
            n*(Ho+1)..n*(Ho+1)+Ho-1.  Row n*(Ho+1)+Ho is a garbage row mixing
            adjacent images' padding -- it is never consumed (keep it that way if
            the row axis is ever grid-tiled).
            """
            Ho = H // 2
            R = N * (Ho + 1) - 1
            half = Wo * Cout
            # Four stride-2 row windows cover all six (parity, ky) taps; cast the
            # small f32 slabs to bf16 for the MXU (weights are stored bf16).
            s0 = a_ref[pl.ds(0, R, 2), :].astype(jnp.bfloat16)
            s1 = a_ref[pl.ds(1, R, 2), :].astype(jnp.bfloat16)
            s2 = a_ref[pl.ds(2, R, 2), :].astype(jnp.bfloat16)
            s3 = a_ref[pl.ds(3, R, 2), :].astype(jnp.bfloat16)
            ze = jnp.dot(s0, w_ref[0], preferred_element_type=jnp.float32)
            ze = ze + jnp.dot(s1, w_ref[1], preferred_element_type=jnp.float32)
            ze = ze + jnp.dot(s2, w_ref[2], preferred_element_type=jnp.float32)
            zo = jnp.dot(s1, w_ref[0], preferred_element_type=jnp.float32)
            zo = zo + jnp.dot(s2, w_ref[1], preferred_element_type=jnp.float32)
            zo = zo + jnp.dot(s3, w_ref[2], preferred_element_type=jnp.float32)
            z = jnp.maximum(ze, zo)                      # MaxPool along H
            t = jnp.maximum(z[:, :half], z[:, half:])    # MaxPool along W (lane halves)
            return jnp.maximum(t + b_ref[...], 0.0)      # bias+ReLU hoisted past pools

        def spill(pooled, dst_ref, Ho, Hp_next):
            # ONE dense (Ho, 128) store per image into the next padded buffer.
            for n in range(N):
                dst_ref[pl.ds(n * Hp_next + 1, Ho), :] = (
                    pooled[n * (Ho + 1):n * (Ho + 1) + Ho])

        p1 = stage(a1_ref, w1_ref, b1_ref, H1, Wo1, O1)
        spill(p1, a2_ref, Ho1, Hp2)
        cp_w2.wait()
        p2 = stage(a2_ref, w2_vm, b2_ref, H2, Wo2, O2)
        spill(p2, a3_ref, Ho2, Hp3)
        cp_w3.wait()
        p3 = stage(a3_ref, w3_vm, b3_ref, H3, Wo3, O3)

        # Head: AdaptiveAvgPool2d((1,1)) + flatten + Linear.  The 1/(Ho*Wo) mean is
        # folded into fcw (tiled over wo), so each image's feature is the sum of its
        # Ho3 pooled rows; one (N,128)x(128,out_dim) matmul, one lane-dense store.
        cp_fc.wait()
        feat = jnp.concatenate(
            [sum(p3[n * (Ho3 + 1) + h:n * (Ho3 + 1) + h + 1] for h in range(Ho3))
             for n in range(N)], axis=0)                 # (N, Wo3*O3) f32
        o_ref[...] = (jnp.dot(feat.astype(jnp.bfloat16), fcw_vm[...],
                              preferred_element_type=jnp.float32)
                      + fcb_ref[...]).astype(o_ref.dtype)

    def full(shape):
        return pl.BlockSpec(shape, lambda i: (0,) * len(shape))

    any_spec = pl.BlockSpec(memory_space=pl.ANY)
    in_specs = [
        full((N * Hp1, K1)),                              # a1: row+lane padded input, f32
        full((3, K1, wide1)),                             # w1 (bf16): needed first
        full((1, Wo1 * O1)), full((1, Wo2 * O2)), full((1, Wo3 * O3)),   # biases, f32
        full((1, out_dim)),                               # fcb, f32
        any_spec, any_spec, any_spec,                     # w2 / w3 / fcw stay in HBM
    ]
    scratch = [
        pltpu.VMEM((N * Hp2, K2), jnp.float32),           # stage-2 padded activations
        pltpu.VMEM((N * Hp3, K3), jnp.float32),           # stage-3 padded activations
        pltpu.VMEM((3, K2, wide2), jnp.bfloat16),         # prefetched stage-2 weights
        pltpu.VMEM((3, K3, wide3), jnp.bfloat16),         # prefetched stage-3 weights
        pltpu.VMEM((Wo3 * O3, out_dim), jnp.bfloat16),    # prefetched FC weight
        pltpu.SemaphoreType.DMA((3,)),                    # one sem per manual DMA
    ]
    return pl.pallas_call(
        kernel,
        out_shape=jax.ShapeDtypeStruct((N, out_dim), jnp.float32),
        grid=(1,),
        in_specs=in_specs,
        out_specs=full((N, out_dim)),
        scratch_shapes=scratch,
        compiler_params=pltpu.CompilerParams(
            dimension_semantics=("arbitrary",)),          # tiny problem: one TC
    )


def make_forward(params, x_shape):
    """Build a jitted forward: NCHW input -> (N, out_dim) logits, one pallas_call."""
    N, Cin0, H0, W0 = (int(d) for d in x_shape)
    assert H0 % 8 == 0 and W0 % 8 == 0, "needs three even MaxPool2d(2) stages"
    packed, cfgs, head_hw = pack_params(params, H0, W0, Cin0)
    out_dim = int(params["fc_w"].shape[0])
    fused = _build_fused_call(N, cfgs, head_hw, out_dim)
    K1 = cfgs[0][4]

    def forward(x_nchw):
        # NCHW -> NHWC, pad one zero row above/below each image, flatten to a 2-D
        # slab (rows = batch * padded rows, lanes = (w, c) zero-padded to 128).
        # TODO(synk): at real CT sizes fold this pad/reshape into the kernel's input
        # DMA (it is an extra HBM pass), tile the row axis with a grid (re-derived
        # for v7x's 64 MiB VMEM) and mark it "parallel" for megacore sharding.
        x = jnp.transpose(x_nchw, (0, 2, 3, 1)).astype(jnp.float32)
        x = jnp.pad(x, ((0, 0), (1, 1), (0, 0), (0, 0)))
        a1 = x.reshape(N * (H0 + 2), W0 * Cin0)
        a1 = jnp.pad(a1, ((0, 0), (0, K1 - W0 * Cin0)))
        return fused(a1, *packed)

    return jax.jit(forward)


# ----------------------------------------------------------------------------
# Pure-JAX/XLA reference mirroring the PyTorch module, and parameter init.
# ----------------------------------------------------------------------------
def reference_forward(x_nchw, params):
    x = jnp.transpose(x_nchw, (0, 2, 3, 1))
    for (w, b) in params["convs"]:
        w_hwio = jnp.transpose(w, (2, 3, 1, 0))
        x = jax.lax.conv_general_dilated(
            x, w_hwio, window_strides=(1, 1), padding="SAME",
            dimension_numbers=("NHWC", "HWIO", "NHWC")) + b
        x = jnp.maximum(x, 0.0)
        x = jax.lax.reduce_window(x, -jnp.inf, jax.lax.max,
                                  (1, 2, 2, 1), (1, 2, 2, 1), "VALID")
    feat = jnp.mean(x, axis=(1, 2))
    return feat @ params["fc_w"].T + params["fc_b"]


def init_params(key, out_dim=128):
    ks = jax.random.split(key, 8)
    convs = []
    chans = [(3, 16), (16, 32), (32, 64)]
    for i, (cin, cout) in enumerate(chans):
        w = 0.1 * jax.random.normal(ks[2 * i], (cout, cin, 3, 3), jnp.float32)
        b = 0.1 * jax.random.normal(ks[2 * i + 1], (cout,), jnp.float32)
        convs.append((w, b))
    fc_w = 0.1 * jax.random.normal(ks[6], (out_dim, 64), jnp.float32)
    fc_b = 0.1 * jax.random.normal(ks[7], (out_dim,), jnp.float32)
    return {"convs": convs, "fc_w": fc_w, "fc_b": fc_b}


if __name__ == "__main__":
    key = jax.random.PRNGKey(0)
    k_param, k_x = jax.random.split(key)
    params = init_params(k_param, out_dim=128)
    x = jax.random.normal(k_x, (2, 3, 16, 16), jnp.float32)   # NCHW, like PyTorch

    forward = make_forward(params, x.shape)
    out = jax.block_until_ready(forward(x))
    ref = jax.block_until_ready(reference_forward(x, params))

    assert out.shape == (2, 128) and out.dtype == jnp.float32
    # bf16-packed weights / bf16 MXU inputs with f32 accumulation: tolerance relaxed
    # vs. the all-f32 version (per the perf review).
    np.testing.assert_allclose(np.asarray(out), np.asarray(ref), rtol=2e-2, atol=2e-2)
    print("KERNEL_OK")
</pallas_src>

<mosaic_0001>
module attributes {stable_mosaic.version = 11 : i64} {
  func.func @kernel(%arg0: i32, %arg1: memref<36x128xf32, #tpu.memory_space<vmem>>, %arg2: memref<3x128x256xbf16, #tpu.memory_space<vmem>>, %arg3: memref<1x128xf32, #tpu.memory_space<vmem>>, %arg4: memref<1x128xf32, #tpu.memory_space<vmem>>, %arg5: memref<1x128xf32, #tpu.memory_space<vmem>>, %arg6: memref<1x128xf32, #tpu.memory_space<vmem>>, %arg7: memref<3x128x256xbf16, #tpu.memory_space<any>>, %arg8: memref<3x128x256xbf16, #tpu.memory_space<any>>, %arg9: memref<128x128xbf16, #tpu.memory_space<any>>, %arg10: memref<2x128xf32, #tpu.memory_space<vmem>>, %arg11: memref<20x128xf32, #tpu.memory_space<vmem>>, %arg12: memref<12x128xf32, #tpu.memory_space<vmem>>, %arg13: memref<3x128x256xbf16, #tpu.memory_space<vmem>>, %arg14: memref<3x128x256xbf16, #tpu.memory_space<vmem>>, %arg15: memref<128x128xbf16, #tpu.memory_space<vmem>>, %arg16: memref<3x!tpu.dma_semaphore, #tpu.memory_space<semaphore_mem>>) attributes {dimension_semantics = [#tpu.dimension_semantics<arbitrary>], iteration_bounds = array<i64: 1>, scalar_prefetch = 0 : i64, scratch_operands = 6 : i64, tpu.core_type = #tpu.core_type<tc>, window_params = [{pipeline_mode = #tpu.pipeline_mode<synchronous>, transform_indices = @transform_0, window_bounds = array<i64: 36, 128>}, {pipeline_mode = #tpu.pipeline_mode<synchronous>, transform_indices = @transform_1, window_bounds = array<i64: 3, 128, 256>}, {pipeline_mode = #tpu.pipeline_mode<synchronous>, transform_indices = @transform_2, window_bounds = array<i64: 1, 128>}, {pipeline_mode = #tpu.pipeline_mode<synchronous>, transform_indices = @transform_3, window_bounds = array<i64: 1, 128>}, {pipeline_mode = #tpu.pipeline_mode<synchronous>, transform_indices = @transform_4, window_bounds = array<i64: 1, 128>}, {pipeline_mode = #tpu.pipeline_mode<synchronous>, transform_indices = @transform_5, window_bounds = array<i64: 1, 128>}, {}, {}, {}, {pipeline_mode = #tpu.pipeline_mode<synchronous>, transform_indices = @transform_9, window_bounds = array<i64: 2, 128>}]} {
    %c0_i32 = arith.constant 0 : i32
    %0 = tpu.memref_slice %arg16[%c0_i32] : memref<3x!tpu.dma_semaphore, #tpu.memory_space<semaphore_mem>> -> memref<1x!tpu.dma_semaphore, #tpu.memory_space<semaphore_mem>>
    %1 = tpu.memref_squeeze %0 : memref<1x!tpu.dma_semaphore, #tpu.memory_space<semaphore_mem>> -> memref<!tpu.dma_semaphore, #tpu.memory_space<semaphore_mem>>
    tpu.enqueue_dma source(%arg7 : memref<3x128x256xbf16, #tpu.memory_space<any>>) target(%arg13 : memref<3x128x256xbf16, #tpu.memory_space<vmem>>) target_semaphore(%1 : memref<!tpu.dma_semaphore, #tpu.memory_space<semaphore_mem>>)
    %c1_i32 = arith.constant 1 : i32
    %2 = tpu.memref_slice %arg16[%c1_i32] : memref<3x!tpu.dma_semaphore, #tpu.memory_space<semaphore_mem>> -> memref<1x!tpu.dma_semaphore, #tpu.memory_space<semaphore_mem>>
    %3 = tpu.memref_squeeze %2 : memref<1x!tpu.dma_semaphore, #tpu.memory_space<semaphore_mem>> -> memref<!tpu.dma_semaphore, #tpu.memory_space<semaphore_mem>>
    tpu.enqueue_dma source(%arg8 : memref<3x128x256xbf16, #tpu.memory_space<any>>) target(%arg14 : memref<3x128x256xbf16, #tpu.memory_space<vmem>>) target_semaphore(%3 : memref<!tpu.dma_semaphore, #tpu.memory_space<semaphore_mem>>)
    %c2_i32 = arith.constant 2 : i32
    %4 = tpu.memref_slice %arg16[%c2_i32] : memref<3x!tpu.dma_semaphore, #tpu.memory_space<semaphore_mem>> -> memref<1x!tpu.dma_semaphore, #tpu.memory_space<semaphore_mem>>
    %5 = tpu.memref_squeeze %4 : memref<1x!tpu.dma_semaphore, #tpu.memory_space<semaphore_mem>> -> memref<!tpu.dma_semaphore, #tpu.memory_space<semaphore_mem>>
    tpu.enqueue_dma source(%arg9 : memref<128x128xbf16, #tpu.memory_space<any>>) target(%arg15 : memref<128x128xbf16, #tpu.memory_space<vmem>>) target_semaphore(%5 : memref<!tpu.dma_semaphore, #tpu.memory_space<semaphore_mem>>)
    %cst = arith.constant 0.000000e+00 : f32
    %6 = vector.broadcast %cst : f32 to vector<1x128xf32>
    %cst_0 = arith.constant 0.000000e+00 : f32
    %7 = vector.broadcast %cst_0 : f32 to vector<1x128xf32>
    %c0 = arith.constant 0 : index
    %c0_1 = arith.constant 0 : index
    %8 = vector.load %arg11[%c0, %c0_1] : memref<20x128xf32, #tpu.memory_space<vmem>>, vector<1x128xf32>
    tpu.vector_store %arg11[%c0, %c0_1], %6 {strides = array<i32>} : memref<20x128xf32, #tpu.memory_space<vmem>>, vector<1x128xf32>,
    %c9 = arith.constant 9 : index
    %c0_2 = arith.constant 0 : index
    %9 = vector.load %arg11[%c9, %c0_2] : memref<20x128xf32, #tpu.memory_space<vmem>>, vector<1x128xf32>
    tpu.vector_store %arg11[%c9, %c0_2], %6 {strides = array<i32>} : memref<20x128xf32, #tpu.memory_space<vmem>>, vector<1x128xf32>,
    %c0_3 = arith.constant 0 : index
    %c0_4 = arith.constant 0 : index
    %10 = vector.load %arg12[%c0_3, %c0_4] : memref<12x128xf32, #tpu.memory_space<vmem>>, vector<1x128xf32>
    tpu.vector_store %arg12[%c0_3, %c0_4], %7 {strides = array<i32>} : memref<12x128xf32, #tpu.memory_space<vmem>>, vector<1x128xf32>,
    %c5 = arith.constant 5 : index
    %c0_5 = arith.constant 0 : index
    %11 = vector.load %arg12[%c5, %c0_5] : memref<12x128xf32, #tpu.memory_space<vmem>>, vector<1x128xf32>
    tpu.vector_store %arg12[%c5, %c0_5], %7 {strides = array<i32>} : memref<12x128xf32, #tpu.memory_space<vmem>>, vector<1x128xf32>,
    %c10 = arith.constant 10 : index
    %c0_6 = arith.constant 0 : index
    %12 = vector.load %arg11[%c10, %c0_6] : memref<20x128xf32, #tpu.memory_space<vmem>>, vector<1x128xf32>
    tpu.vector_store %arg11[%c10, %c0_6], %6 {strides = array<i32>} : memref<20x128xf32, #tpu.memory_space<vmem>>, vector<1x128xf32>,
    %c19 = arith.constant 19 : index
    %c0_7 = arith.constant 0 : index
    %13 = vector.load %arg11[%c19, %c0_7] : memref<20x128xf32, #tpu.memory_space<vmem>>, vector<1x128xf32>
    tpu.vector_store %arg11[%c19, %c0_7], %6 {strides = array<i32>} : memref<20x128xf32, #tpu.memory_space<vmem>>, vector<1x128xf32>,
    %c6 = arith.constant 6 : index
    %c0_8 = arith.constant 0 : index
    %14 = vector.load %arg12[%c6, %c0_8] : memref<12x128xf32, #tpu.memory_space<vmem>>, vector<1x128xf32>
    tpu.vector_store %arg12[%c6, %c0_8], %7 {strides = array<i32>} : memref<12x128xf32, #tpu.memory_space<vmem>>, vector<1x128xf32>,
    %c11 = arith.constant 11 : index
    %c0_9 = arith.constant 0 : index
    %15 = vector.load %arg12[%c11, %c0_9] : memref<12x128xf32, #tpu.memory_space<vmem>>, vector<1x128xf32>
    tpu.vector_store %arg12[%c11, %c0_9], %7 {strides = array<i32>} : memref<12x128xf32, #tpu.memory_space<vmem>>, vector<1x128xf32>,
    %c0_10 = arith.constant 0 : index
    %c0_11 = arith.constant 0 : index
    %16 = tpu.strided_load %arg1[%c0_10, %c0_11] {strides = array<i32: 2, 1>} : memref<36x128xf32, #tpu.memory_space<vmem>>, vector<17x128xf32>
    %17 = arith.truncf %16 : vector<17x128xf32> to vector<17x128xbf16>
    %c1 = arith.constant 1 : index
    %c0_12 = arith.constant 0 : index
    %18 = tpu.strided_load %arg1[%c1, %c0_12] {strides = array<i32: 2, 1>} : memref<36x128xf32, #tpu.memory_space<vmem>>, vector<17x128xf32>
    %19 = arith.truncf %18 : vector<17x128xf32> to vector<17x128xbf16>
    %c2 = arith.constant 2 : index
    %c0_13 = arith.constant 0 : index
    %20 = tpu.strided_load %arg1[%c2, %c0_13] {strides = array<i32: 2, 1>} : memref<36x128xf32, #tpu.memory_space<vmem>>, vector<17x128xf32>
    %21 = arith.truncf %20 : vector<17x128xf32> to vector<17x128xbf16>
    %c3 = arith.constant 3 : index
    %c0_14 = arith.constant 0 : index
    %22 = tpu.strided_load %arg1[%c3, %c0_14] {strides = array<i32: 2, 1>} : memref<36x128xf32, #tpu.memory_space<vmem>>, vector<17x128xf32>
    %23 = arith.truncf %22 : vector<17x128xf32> to vector<17x128xbf16>
    %c0_15 = arith.constant 0 : index
    %c0_16 = arith.constant 0 : index
    %c0_17 = arith.constant 0 : index
    %24 = vector.load %arg2[%c0_15, %c0_16, %c0_17] : memref<3x128x256xbf16, #tpu.memory_space<vmem>>, vector<1x128x256xbf16>
    %25 = vector.shape_cast %24 : vector<1x128x256xbf16> to vector<128x256xbf16>
    %cst_18 = arith.constant dense<0.000000e+00> : vector<17x256xf32>
    %26 = tpu.matmul %17, %25, %cst_18 {dimension_numbers = #tpu.dot_dimension_numbers<[1], [0], [0], [1], [0, 0, 1, 1], [], []>} : vector<17x128xbf16>, vector<128x256xbf16>, vector<17x256xf32> -> vector<17x256xf32>
    %c1_19 = arith.constant 1 : index
    %c0_20 = arith.constant 0 : index
    %c0_21 = arith.constant 0 : index
    %27 = vector.load %arg2[%c1_19, %c0_20, %c0_21] : memref<3x128x256xbf16, #tpu.memory_space<vmem>>, vector<1x128x256xbf16>
    %28 = vector.shape_cast %27 : vector<1x128x256xbf16> to vector<128x256xbf16>
    %cst_22 = arith.constant dense<0.000000e+00> : vector<17x256xf32>
    %29 = tpu.matmul %19, %28, %cst_22 {dimension_numbers = #tpu.dot_dimension_numbers<[1], [0], [0], [1], [0, 0, 1, 1], [], []>} : vector<17x128xbf16>, vector<128x256xbf16>, vector<17x256xf32> -> vector<17x256xf32>
    %30 = arith.addf %26, %29 : vector<17x256xf32>
    %c2_23 = arith.constant 2 : index
    %c0_24 = arith.constant 0 : index
    %c0_25 = arith.constant 0 : index
    %31 = vector.load %arg2[%c2_23, %c0_24, %c0_25] : memref<3x128x256xbf16, #tpu.memory_space<vmem>>, vector<1x128x256xbf16>
    %32 = vector.shape_cast %31 : vector<1x128x256xbf16> to vector<128x256xbf16>
    %cst_26 = arith.constant dense<0.000000e+00> : vector<17x256xf32>
    %33 = tpu.matmul %21, %32, %cst_26 {dimension_numbers = #tpu.dot_dimension_numbers<[1], [0], [0], [1], [0, 0, 1, 1], [], []>} : vector<17x128xbf16>, vector<128x256xbf16>, vector<17x256xf32> -> vector<17x256xf32>
    %34 = arith.addf %30, %33 : vector<17x256xf32>
    %c0_27 = arith.constant 0 : index
    %c0_28 = arith.constant 0 : index
    %c0_29 = arith.constant 0 : index
    %35 = vector.load %arg2[%c0_27, %c0_28, %c0_29] : memref<3x128x256xbf16, #tpu.memory_space<vmem>>, vector<1x128x256xbf16>
    %36 = vector.shape_cast %35 : vector<1x128x256xbf16> to vector<128x256xbf16>
    %cst_30 = arith.constant dense<0.000000e+00> : vector<17x256xf32>
    %37 = tpu.matmul %19, %36, %cst_30 {dimension_numbers = #tpu.dot_dimension_numbers<[1], [0], [0], [1], [0, 0, 1, 1], [], []>} : vector<17x128xbf16>, vector<128x256xbf16>, vector<17x256xf32> -> vector<17x256xf32>
    %c1_31 = arith.constant 1 : index
    %c0_32 = arith.constant 0 : index
    %c0_33 = arith.constant 0 : index
    %38 = vector.load %arg2[%c1_31, %c0_32, %c0_33] : memref<3x128x256xbf16, #tpu.memory_space<vmem>>, vector<1x128x256xbf16>
    %39 = vector.shape_cast %38 : vector<1x128x256xbf16> to vector<128x256xbf16>
    %cst_34 = arith.constant dense<0.000000e+00> : vector<17x256xf32>
    %40 = tpu.matmul %21, %39, %cst_34 {dimension_numbers = #tpu.dot_dimension_numbers<[1], [0], [0], [1], [0, 0, 1, 1], [], []>} : vector<17x128xbf16>, vector<128x256xbf16>, vector<17x256xf32> -> vector<17x256xf32>
    %41 = arith.addf %37, %40 : vector<17x256xf32>
    %c2_35 = arith.constant 2 : index
    %c0_36 = arith.constant 0 : index
    %c0_37 = arith.constant 0 : index
    %42 = vector.load %arg2[%c2_35, %c0_36, %c0_37] : memref<3x128x256xbf16, #tpu.memory_space<vmem>>, vector<1x128x256xbf16>
    %43 = vector.shape_cast %42 : vector<1x128x256xbf16> to vector<128x256xbf16>
    %cst_38 = arith.constant dense<0.000000e+00> : vector<17x256xf32>
    %44 = tpu.matmul %23, %43, %cst_38 {dimension_numbers = #tpu.dot_dimension_numbers<[1], [0], [0], [1], [0, 0, 1, 1], [], []>} : vector<17x128xbf16>, vector<128x256xbf16>, vector<17x256xf32> -> vector<17x256xf32>
    %45 = arith.addf %41, %44 : vector<17x256xf32>
    %46 = arith.maximumf %34, %45 : vector<17x256xf32>
    %47 = vector.extract_strided_slice %46 {offsets = [0, 0], sizes = [17, 128], strides = [1, 1]} : vector<17x256xf32> to vector<17x128xf32>
    %48 = vector.extract_strided_slice %46 {offsets = [0, 128], sizes = [17, 128], strides = [1, 1]} : vector<17x256xf32> to vector<17x128xf32>
    %49 = arith.maximumf %47, %48 : vector<17x128xf32>
    %c0_39 = arith.constant 0 : index
    %c0_40 = arith.constant 0 : index
    %50 = vector.load %arg3[%c0_39, %c0_40] : memref<1x128xf32, #tpu.memory_space<vmem>>, vector<1x128xf32>
    %51 = vector.broadcast %50 : vector<1x128xf32> to vector<17x128xf32>
    %52 = arith.addf %49, %51 : vector<17x128xf32>
    %cst_41 = arith.constant 0.000000e+00 : f32
    %53 = vector.broadcast %cst_41 : f32 to vector<17x128xf32>
    %54 = arith.maximumf %52, %53 : vector<17x128xf32>
    %55 = vector.extract_strided_slice %54 {offsets = [0, 0], sizes = [8, 128], strides = [1, 1]} : vector<17x128xf32> to vector<8x128xf32>
    %c1_42 = arith.constant 1 : index
    %c0_43 = arith.constant 0 : index
    %56 = vector.load %arg11[%c1_42, %c0_43] : memref<20x128xf32, #tpu.memory_space<vmem>>, vector<8x128xf32>
    tpu.vector_store %arg11[%c1_42, %c0_43], %55 {strides = array<i32>} : memref<20x128xf32, #tpu.memory_space<vmem>>, vector<8x128xf32>,
    %57 = vector.extract_strided_slice %54 {offsets = [9, 0], sizes = [8, 128], strides = [1, 1]} : vector<17x128xf32> to vector<8x128xf32>
    %c11_44 = arith.constant 11 : index
    %c0_45 = arith.constant 0 : index
    %58 = vector.load %arg11[%c11_44, %c0_45] : memref<20x128xf32, #tpu.memory_space<vmem>>, vector<8x128xf32>
    tpu.vector_store %arg11[%c11_44, %c0_45], %57 {strides = array<i32>} : memref<20x128xf32, #tpu.memory_space<vmem>>, vector<8x128xf32>,
    %c0_i32_46 = arith.constant 0 : i32
    %59 = tpu.memref_slice %arg16[%c0_i32_46] : memref<3x!tpu.dma_semaphore, #tpu.memory_space<semaphore_mem>> -> memref<1x!tpu.dma_semaphore, #tpu.memory_space<semaphore_mem>>
    %60 = tpu.memref_squeeze %59 : memref<1x!tpu.dma_semaphore, #tpu.memory_space<semaphore_mem>> -> memref<!tpu.dma_semaphore, #tpu.memory_space<semaphore_mem>>
    tpu.wait_dma2 semaphore(%60 : memref<!tpu.dma_semaphore, #tpu.memory_space<semaphore_mem>>) src(%arg7 : memref<3x128x256xbf16, #tpu.memory_space<any>>) dst(%arg13 : memref<3x128x256xbf16, #tpu.memory_space<vmem>>)
    %c0_47 = arith.constant 0 : index
    %c0_48 = arith.constant 0 : index
    %61 = tpu.strided_load %arg11[%c0_47, %c0_48] {strides = array<i32: 2, 1>} : memref<20x128xf32, #tpu.memory_space<vmem>>, vector<9x128xf32>
    %62 = arith.truncf %61 : vector<9x128xf32> to vector<9x128xbf16>
    %c1_49 = arith.constant 1 : index
    %c0_50 = arith.constant 0 : index
    %63 = tpu.strided_load %arg11[%c1_49, %c0_50] {strides = array<i32: 2, 1>} : memref<20x128xf32, #tpu.memory_space<vmem>>, vector<9x128xf32>
    %64 = arith.truncf %63 : vector<9x128xf32> to vector<9x128xbf16>
    %c2_51 = arith.constant 2 : index
    %c0_52 = arith.constant 0 : index
    %65 = tpu.strided_load %arg11[%c2_51, %c0_52] {strides = array<i32: 2, 1>} : memref<20x128xf32, #tpu.memory_space<vmem>>, vector<9x128xf32>
    %66 = arith.truncf %65 : vector<9x128xf32> to vector<9x128xbf16>
    %c3_53 = arith.constant 3 : index
    %c0_54 = arith.constant 0 : index
    %67 = tpu.strided_load %arg11[%c3_53, %c0_54] {strides = array<i32: 2, 1>} : memref<20x128xf32, #tpu.memory_space<vmem>>, vector<9x128xf32>
    %68 = arith.truncf %67 : vector<9x128xf32> to vector<9x128xbf16>
    %c0_55 = arith.constant 0 : index
    %c0_56 = arith.constant 0 : index
    %c0_57 = arith.constant 0 : index
    %69 = vector.load %arg13[%c0_55, %c0_56, %c0_57] : memref<3x128x256xbf16, #tpu.memory_space<vmem>>, vector<1x128x256xbf16>
    %70 = vector.shape_cast %69 : vector<1x128x256xbf16> to vector<128x256xbf16>
    %cst_58 = arith.constant dense<0.000000e+00> : vector<9x256xf32>
    %71 = tpu.matmul %62, %70, %cst_58 {dimension_numbers = #tpu.dot_dimension_numbers<[1], [0], [0], [1], [0, 0, 1, 1], [], []>} : vector<9x128xbf16>, vector<128x256xbf16>, vector<9x256xf32> -> vector<9x256xf32>
    %c1_59 = arith.constant 1 : index
    %c0_60 = arith.constant 0 : index
    %c0_61 = arith.constant 0 : index
    %72 = vector.load %arg13[%c1_59, %c0_60, %c0_61] : memref<3x128x256xbf16, #tpu.memory_space<vmem>>, vector<1x128x256xbf16>
    %73 = vector.shape_cast %72 : vector<1x128x256xbf16> to vector<128x256xbf16>
    %cst_62 = arith.constant dense<0.000000e+00> : vector<9x256xf32>
    %74 = tpu.matmul %64, %73, %cst_62 {dimension_numbers = #tpu.dot_dimension_numbers<[1], [0], [0], [1], [0, 0, 1, 1], [], []>} : vector<9x128xbf16>, vector<128x256xbf16>, vector<9x256xf32> -> vector<9x256xf32>
    %75 = arith.addf %71, %74 : vector<9x256xf32>
    %c2_63 = arith.constant 2 : index
    %c0_64 = arith.constant 0 : index
    %c0_65 = arith.constant 0 : index
    %76 = vector.load %arg13[%c2_63, %c0_64, %c0_65] : memref<3x128x256xbf16, #tpu.memory_space<vmem>>, vector<1x128x256xbf16>
    %77 = vector.shape_cast %76 : vector<1x128x256xbf16> to vector<128x256xbf16>
    %cst_66 = arith.constant dense<0.000000e+00> : vector<9x256xf32>
    %78 = tpu.matmul %66, %77, %cst_66 {dimension_numbers = #tpu.dot_dimension_numbers<[1], [0], [0], [1], [0, 0, 1, 1], [], []>} : vector<9x128xbf16>, vector<128x256xbf16>, vector<9x256xf32> -> vector<9x256xf32>
    %79 = arith.addf %75, %78 : vector<9x256xf32>
    %c0_67 = arith.constant 0 : index
    %c0_68 = arith.constant 0 : index
    %c0_69 = arith.constant 0 : index
    %80 = vector.load %arg13[%c0_67, %c0_68, %c0_69] : memref<3x128x256xbf16, #tpu.memory_space<vmem>>, vector<1x128x256xbf16>
    %81 = vector.shape_cast %80 : vector<1x128x256xbf16> to vector<128x256xbf16>
    %cst_70 = arith.constant dense<0.000000e+00> : vector<9x256xf32>
    %82 = tpu.matmul %64, %81, %cst_70 {dimension_numbers = #tpu.dot_dimension_numbers<[1], [0], [0], [1], [0, 0, 1, 1], [], []>} : vector<9x128xbf16>, vector<128x256xbf16>, vector<9x256xf32> -> vector<9x256xf32>
    %c1_71 = arith.constant 1 : index
    %c0_72 = arith.constant 0 : index
    %c0_73 = arith.constant 0 : index
    %83 = vector.load %arg13[%c1_71, %c0_72, %c0_73] : memref<3x128x256xbf16, #tpu.memory_space<vmem>>, vector<1x128x256xbf16>
    %84 = vector.shape_cast %83 : vector<1x128x256xbf16> to vector<128x256xbf16>
    %cst_74 = arith.constant dense<0.000000e+00> : vector<9x256xf32>
    %85 = tpu.matmul %66, %84, %cst_74 {dimension_numbers = #tpu.dot_dimension_numbers<[1], [0], [0], [1], [0, 0, 1, 1], [], []>} : vector<9x128xbf16>, vector<128x256xbf16>, vector<9x256xf32> -> vector<9x256xf32>
    %86 = arith.addf %82, %85 : vector<9x256xf32>
    %c2_75 = arith.constant 2 : index
    %c0_76 = arith.constant 0 : index
    %c0_77 = arith.constant 0 : index
    %87 = vector.load %arg13[%c2_75, %c0_76, %c0_77] : memref<3x128x256xbf16, #tpu.memory_space<vmem>>, vector<1x128x256xbf16>
    %88 = vector.shape_cast %87 : vector<1x128x256xbf16> to vector<128x256xbf16>
    %cst_78 = arith.constant dense<0.000000e+00> : vector<9x256xf32>
    %89 = tpu.matmul %68, %88, %cst_78 {dimension_numbers = #tpu.dot_dimension_numbers<[1], [0], [0], [1], [0, 0, 1, 1], [], []>} : vector<9x128xbf16>, vector<128x256xbf16>, vector<9x256xf32> -> vector<9x256xf32>
    %90 = arith.addf %86, %89 : vector<9x256xf32>
    %91 = arith.maximumf %79, %90 : vector<9x256xf32>
    %92 = vector.extract_strided_slice %91 {offsets = [0, 0], sizes = [9, 128], strides = [1, 1]} : vector<9x256xf32> to vector<9x128xf32>
    %93 = vector.extract_strided_slice %91 {offsets = [0, 128], sizes = [9, 128], strides = [1, 1]} : vector<9x256xf32> to vector<9x128xf32>
    %94 = arith.maximumf %92, %93 : vector<9x128xf32>
    %c0_79 = arith.constant 0 : index
    %c0_80 = arith.constant 0 : index
    %95 = vector.load %arg4[%c0_79, %c0_80] : memref<1x128xf32, #tpu.memory_space<vmem>>, vector<1x128xf32>
    %96 = vector.broadcast %95 : vector<1x128xf32> to vector<9x128xf32>
    %97 = arith.addf %94, %96 : vector<9x128xf32>
    %cst_81 = arith.constant 0.000000e+00 : f32
    %98 = vector.broadcast %cst_81 : f32 to vector<9x128xf32>
    %99 = arith.maximumf %97, %98 : vector<9x128xf32>
    %100 = vector.extract_strided_slice %99 {offsets = [0, 0], sizes = [4, 128], strides = [1, 1]} : vector<9x128xf32> to vector<4x128xf32>
    %c1_82 = arith.constant 1 : index
    %c0_83 = arith.constant 0 : index
    %101 = vector.load %arg12[%c1_82, %c0_83] : memref<12x128xf32, #tpu.memory_space<vmem>>, vector<4x128xf32>
    tpu.vector_store %arg12[%c1_82, %c0_83], %100 {strides = array<i32>} : memref<12x128xf32, #tpu.memory_space<vmem>>, vector<4x128xf32>,
    %102 = vector.extract_strided_slice %99 {offsets = [5, 0], sizes = [4, 128], strides = [1, 1]} : vector<9x128xf32> to vector<4x128xf32>
    %c7 = arith.constant 7 : index
    %c0_84 = arith.constant 0 : index
    %103 = vector.load %arg12[%c7, %c0_84] : memref<12x128xf32, #tpu.memory_space<vmem>>, vector<4x128xf32>
    tpu.vector_store %arg12[%c7, %c0_84], %102 {strides = array<i32>} : memref<12x128xf32, #tpu.memory_space<vmem>>, vector<4x128xf32>,
    %c1_i32_85 = arith.constant 1 : i32
    %104 = tpu.memref_slice %arg16[%c1_i32_85] : memref<3x!tpu.dma_semaphore, #tpu.memory_space<semaphore_mem>> -> memref<1x!tpu.dma_semaphore, #tpu.memory_space<semaphore_mem>>
    %105 = tpu.memref_squeeze %104 : memref<1x!tpu.dma_semaphore, #tpu.memory_space<semaphore_mem>> -> memref<!tpu.dma_semaphore, #tpu.memory_space<semaphore_mem>>
    tpu.wait_dma2 semaphore(%105 : memref<!tpu.dma_semaphore, #tpu.memory_space<semaphore_mem>>) src(%arg8 : memref<3x128x256xbf16, #tpu.memory_space<any>>) dst(%arg14 : memref<3x128x256xbf16, #tpu.memory_space<vmem>>)
    %c0_86 = arith.constant 0 : index
    %c0_87 = arith.constant 0 : index
    %106 = tpu.strided_load %arg12[%c0_86, %c0_87] {strides = array<i32: 2, 1>} : memref<12x128xf32, #tpu.memory_space<vmem>>, vector<5x128xf32>
    %107 = arith.truncf %106 : vector<5x128xf32> to vector<5x128xbf16>
    %c1_88 = arith.constant 1 : index
    %c0_89 = arith.constant 0 : index
    %108 = tpu.strided_load %arg12[%c1_88, %c0_89] {strides = array<i32: 2, 1>} : memref<12x128xf32, #tpu.memory_space<vmem>>, vector<5x128xf32>
    %109 = arith.truncf %108 : vector<5x128xf32> to vector<5x128xbf16>
    %c2_90 = arith.constant 2 : index
    %c0_91 = arith.constant 0 : index
    %110 = tpu.strided_load %arg12[%c2_90, %c0_91] {strides = array<i32: 2, 1>} : memref<12x128xf32, #tpu.memory_space<vmem>>, vector<5x128xf32>
    %111 = arith.truncf %110 : vector<5x128xf32> to vector<5x128xbf16>
    %c3_92 = arith.constant 3 : index
    %c0_93 = arith.constant 0 : index
    %112 = tpu.strided_load %arg12[%c3_92, %c0_93] {strides = array<i32: 2, 1>} : memref<12x128xf32, #tpu.memory_space<vmem>>, vector<5x128xf32>
    %113 = arith.truncf %112 : vector<5x128xf32> to vector<5x128xbf16>
    %c0_94 = arith.constant 0 : index
    %c0_95 = arith.constant 0 : index
    %c0_96 = arith.constant 0 : index
    %114 = vector.load %arg14[%c0_94, %c0_95, %c0_96] : memref<3x128x256xbf16, #tpu.memory_space<vmem>>, vector<1x128x256xbf16>
    %115 = vector.shape_cast %114 : vector<1x128x256xbf16> to vector<128x256xbf16>
    %cst_97 = arith.constant dense<0.000000e+00> : vector<5x256xf32>
    %116 = tpu.matmul %107, %115, %cst_97 {dimension_numbers = #tpu.dot_dimension_numbers<[1], [0], [0], [1], [0, 0, 1, 1], [], []>} : vector<5x128xbf16>, vector<128x256xbf16>, vector<5x256xf32> -> vector<5x256xf32>
    %c1_98 = arith.constant 1 : index
    %c0_99 = arith.constant 0 : index
    %c0_100 = arith.constant 0 : index
    %117 = vector.load %arg14[%c1_98, %c0_99, %c0_100] : memref<3x128x256xbf16, #tpu.memory_space<vmem>>, vector<1x128x256xbf16>
    %118 = vector.shape_cast %117 : vector<1x128x256xbf16> to vector<128x256xbf16>
    %cst_101 = arith.constant dense<0.000000e+00> : vector<5x256xf32>
    %119 = tpu.matmul %109, %118, %cst_101 {dimension_numbers = #tpu.dot_dimension_numbers<[1], [0], [0], [1], [0, 0, 1, 1], [], []>} : vector<5x128xbf16>, vector<128x256xbf16>, vector<5x256xf32> -> vector<5x256xf32>
    %120 = arith.addf %116, %119 : vector<5x256xf32>
    %c2_102 = arith.constant 2 : index
    %c0_103 = arith.constant 0 : index
    %c0_104 = arith.constant 0 : index
    %121 = vector.load %arg14[%c2_102, %c0_103, %c0_104] : memref<3x128x256xbf16, #tpu.memory_space<vmem>>, vector<1x128x256xbf16>
    %122 = vector.shape_cast %121 : vector<1x128x256xbf16> to vector<128x256xbf16>
    %cst_105 = arith.constant dense<0.000000e+00> : vector<5x256xf32>
    %123 = tpu.matmul %111, %122, %cst_105 {dimension_numbers = #tpu.dot_dimension_numbers<[1], [0], [0], [1], [0, 0, 1, 1], [], []>} : vector<5x128xbf16>, vector<128x256xbf16>, vector<5x256xf32> -> vector<5x256xf32>
    %124 = arith.addf %120, %123 : vector<5x256xf32>
    %c0_106 = arith.constant 0 : index
    %c0_107 = arith.constant 0 : index
    %c0_108 = arith.constant 0 : index
    %125 = vector.load %arg14[%c0_106, %c0_107, %c0_108] : memref<3x128x256xbf16, #tpu.memory_space<vmem>>, vector<1x128x256xbf16>
    %126 = vector.shape_cast %125 : vector<1x128x256xbf16> to vector<128x256xbf16>
    %cst_109 = arith.constant dense<0.000000e+00> : vector<5x256xf32>
    %127 = tpu.matmul %109, %126, %cst_109 {dimension_numbers = #tpu.dot_dimension_numbers<[1], [0], [0], [1], [0, 0, 1, 1], [], []>} : vector<5x128xbf16>, vector<128x256xbf16>, vector<5x256xf32> -> vector<5x256xf32>
    %c1_110 = arith.constant 1 : index
    %c0_111 = arith.constant 0 : index
    %c0_112 = arith.constant 0 : index
    %128 = vector.load %arg14[%c1_110, %c0_111, %c0_112] : memref<3x128x256xbf16, #tpu.memory_space<vmem>>, vector<1x128x256xbf16>
    %129 = vector.shape_cast %128 : vector<1x128x256xbf16> to vector<128x256xbf16>
    %cst_113 = arith.constant dense<0.000000e+00> : vector<5x256xf32>
    %130 = tpu.matmul %111, %129, %cst_113 {dimension_numbers = #tpu.dot_dimension_numbers<[1], [0], [0], [1], [0, 0, 1, 1], [], []>} : vector<5x128xbf16>, vector<128x256xbf16>, vector<5x256xf32> -> vector<5x256xf32>
    %131 = arith.addf %127, %130 : vector<5x256xf32>
    %c2_114 = arith.constant 2 : index
    %c0_115 = arith.constant 0 : index
    %c0_116 = arith.constant 0 : index
    %132 = vector.load %arg14[%c2_114, %c0_115, %c0_116] : memref<3x128x256xbf16, #tpu.memory_space<vmem>>, vector<1x128x256xbf16>
    %133 = vector.shape_cast %132 : vector<1x128x256xbf16> to vector<128x256xbf16>
    %cst_117 = arith.constant dense<0.000000e+00> : vector<5x256xf32>
    %134 = tpu.matmul %113, %133, %cst_117 {dimension_numbers = #tpu.dot_dimension_numbers<[1], [0], [0], [1], [0, 0, 1, 1], [], []>} : vector<5x128xbf16>, vector<128x256xbf16>, vector<5x256xf32> -> vector<5x256xf32>
    %135 = arith.addf %131, %134 : vector<5x256xf32>
    %136 = arith.maximumf %124, %135 : vector<5x256xf32>
    %137 = vector.extract_strided_slice %136 {offsets = [0, 0], sizes = [5, 128], strides = [1, 1]} : vector<5x256xf32> to vector<5x128xf32>
    %138 = vector.extract_strided_slice %136 {offsets = [0, 128], sizes = [5, 128], strides = [1, 1]} : vector<5x256xf32> to vector<5x128xf32>
    %139 = arith.maximumf %137, %138 : vector<5x128xf32>
    %c0_118 = arith.constant 0 : index
    %c0_119 = arith.constant 0 : index
    %140 = vector.load %arg5[%c0_118, %c0_119] : memref<1x128xf32, #tpu.memory_space<vmem>>, vector<1x128xf32>
    %141 = vector.broadcast %140 : vector<1x128xf32> to vector<5x128xf32>
    %142 = arith.addf %139, %141 : vector<5x128xf32>
    %cst_120 = arith.constant 0.000000e+00 : f32
    %143 = vector.broadcast %cst_120 : f32 to vector<5x128xf32>
    %144 = arith.maximumf %142, %143 : vector<5x128xf32>
    %c2_i32_121 = arith.constant 2 : i32
    %145 = tpu.memref_slice %arg16[%c2_i32_121] : memref<3x!tpu.dma_semaphore, #tpu.memory_space<semaphore_mem>> -> memref<1x!tpu.dma_semaphore, #tpu.memory_space<semaphore_mem>>
    %146 = tpu.memref_squeeze %145 : memref<1x!tpu.dma_semaphore, #tpu.memory_space<semaphore_mem>> -> memref<!tpu.dma_semaphore, #tpu.memory_space<semaphore_mem>>
    tpu.wait_dma2 semaphore(%146 : memref<!tpu.dma_semaphore, #tpu.memory_space<semaphore_mem>>) src(%arg9 : memref<128x128xbf16, #tpu.memory_space<any>>) dst(%arg15 : memref<128x128xbf16, #tpu.memory_space<vmem>>)
    %147 = vector.extract_strided_slice %144 {offsets = [0, 0], sizes = [1, 128], strides = [1, 1]} : vector<5x128xf32> to vector<1x128xf32>
    %cst_122 = arith.constant 0.000000e+00 : f32
    %148 = vector.broadcast %cst_122 : f32 to vector<1x128xf32>
    %149 = arith.addf %148, %147 : vector<1x128xf32>
    %150 = vector.extract_strided_slice %144 {offsets = [1, 0], sizes = [1, 128], strides = [1, 1]} : vector<5x128xf32> to vector<1x128xf32>
    %151 = arith.addf %149, %150 : vector<1x128xf32>
    %152 = vector.extract_strided_slice %144 {offsets = [3, 0], sizes = [1, 128], strides = [1, 1]} : vector<5x128xf32> to vector<1x128xf32>
    %cst_123 = arith.constant 0.000000e+00 : f32
    %153 = vector.broadcast %cst_123 : f32 to vector<1x128xf32>
    %154 = arith.addf %153, %152 : vector<1x128xf32>
    %155 = vector.extract_strided_slice %144 {offsets = [4, 0], sizes = [1, 128], strides = [1, 1]} : vector<5x128xf32> to vector<1x128xf32>
    %156 = arith.addf %154, %155 : vector<1x128xf32>
    %157 = tpu.concatenate %151, %156 in 0 : vector<1x128xf32>, vector<1x128xf32> -> vector<2x128xf32>
    %158 = arith.truncf %157 : vector<2x128xf32> to vector<2x128xbf16>
    %c0_124 = arith.constant 0 : index
    %c0_125 = arith.constant 0 : index
    %159 = vector.load %arg15[%c0_124, %c0_125] : memref<128x128xbf16, #tpu.memory_space<vmem>>, vector<128x128xbf16>
    %cst_126 = arith.constant dense<0.000000e+00> : vector<2x128xf32>
    %160 = tpu.matmul %158, %159, %cst_126 {dimension_numbers = #tpu.dot_dimension_numbers<[1], [0], [0], [1], [0, 0, 1, 1], [], []>} : vector<2x128xbf16>, vector<128x128xbf16>, vector<2x128xf32> -> vector<2x128xf32>
    %c0_127 = arith.constant 0 : index
    %c0_128 = arith.constant 0 : index
    %161 = vector.load %arg6[%c0_127, %c0_128] : memref<1x128xf32, #tpu.memory_space<vmem>>, vector<1x128xf32>
    %162 = vector.broadcast %161 : vector<1x128xf32> to vector<2x128xf32>
    %163 = arith.addf %160, %162 : vector<2x128xf32>
    %c0_129 = arith.constant 0 : index
    %c0_130 = arith.constant 0 : index
    %164 = vector.load %arg10[%c0_129, %c0_130] : memref<2x128xf32, #tpu.memory_space<vmem>>, vector<2x128xf32>
    tpu.vector_store %arg10[%c0_129, %c0_130], %163 {strides = array<i32>} : memref<2x128xf32, #tpu.memory_space<vmem>>, vector<2x128xf32>,
    return
  }
  func.func @transform_0(%arg0: i32) -> (i32, i32) {
    %c0_i32 = arith.constant 0 : i32
    %c0_i32_0 = arith.constant 0 : i32
    %c0_i32_1 = arith.constant 0 : i32
    return %c0_i32, %c0_i32_0 : i32, i32
  }
  func.func @transform_1(%arg0: i32) -> (i32, i32, i32) {
    %c0_i32 = arith.constant 0 : i32
    %c0_i32_0 = arith.constant 0 : i32
    %c0_i32_1 = arith.constant 0 : i32
    %c0_i32_2 = arith.constant 0 : i32
    return %c0_i32, %c0_i32_0, %c0_i32_1 : i32, i32, i32
  }
  func.func @transform_2(%arg0: i32) -> (i32, i32) {
    %c0_i32 = arith.constant 0 : i32
    %c0_i32_0 = arith.constant 0 : i32
    %c0_i32_1 = arith.constant 0 : i32
    return %c0_i32, %c0_i32_0 : i32, i32
  }
  func.func @transform_3(%arg0: i32) -> (i32, i32) {
    %c0_i32 = arith.constant 0 : i32
    %c0_i32_0 = arith.constant 0 : i32
    %c0_i32_1 = arith.constant 0 : i32
    return %c0_i32, %c0_i32_0 : i32, i32
  }
  func.func @transform_4(%arg0: i32) -> (i32, i32) {
    %c0_i32 = arith.constant 0 : i32
    %c0_i32_0 = arith.constant 0 : i32
    %c0_i32_1 = arith.constant 0 : i32
    return %c0_i32, %c0_i32_0 : i32, i32
  }
  func.func @transform_5(%arg0: i32) -> (i32, i32) {
    %c0_i32 = arith.constant 0 : i32
    %c0_i32_0 = arith.constant 0 : i32
    %c0_i32_1 = arith.constant 0 : i32
    return %c0_i32, %c0_i32_0 : i32, i32
  }
  func.func @transform_9(%arg0: i32) -> (i32, i32) {
    %c0_i32 = arith.constant 0 : i32
    %c0_i32_0 = arith.constant 0 : i32
    %c0_i32_1 = arith.constant 0 : i32
    return %c0_i32, %c0_i32_0 : i32, i32
  }
}

</mosaic_0001>

<bundles_post_ra>
// kernel: forward.1
= control target key start
LH: loop header
LB: loop body
LE: loop exit
PB: predicated region body
PF: predicated region fallthrough
CT: control target
= control target key end

     0   :  { %14 = vsyncpa [#allocation9], 0  ;;  %s3625_s0 = inlined_call_operand.vmem [shape: f32[36,128], index: 0, kind: input, shape index: {}]   ;;  %s3626_s1 = inlined_call_operand.hbm [shape: bf16[3,128,256], index: 1, kind: input, shape index: {}]   ;;  %s3627_s2 = inlined_call_operand.vmem [shape: f32[1,128], index: 2, kind: input, shape index: {}]   ;;  %s3628_s3 = inlined_call_operand.vmem [shape: f32[1,128], index: 3, kind: input, shape index: {}]   ;;  %s3629_s4 = inlined_call_operand.vmem [shape: f32[1,128], index: 4, kind: input, shape index: {}]   ;;  %s3630_s5 = inlined_call_operand.vmem [shape: f32[1,128], index: 5, kind: input, shape index: {}]   ;;  %s3631_s6 = inlined_call_operand.hbm [shape: bf16[3,128,256], index: 6, kind: input, shape index: {}]   ;;  %s3632_s7 = inlined_call_operand.vmem [shape: bf16[3,128,256], index: 7, kind: input, shape index: {}]   ;;  %s3633_s8 = inlined_call_operand.vmem [shape: bf16[128,128], index: 8, kind: input, shape index: {}]   ;;  %s3634_s9 = inlined_call_operand.hbm [shape: f32[2,128], index: 9, kind: output, shape index: {}]  }
   0x1   :  { %15 = vsyncpa [#allocation10], 0  ;;  %s2693_s30 = smov [#allocation8]  }
   0x2   :  { %s23_s10 = sshll.u32 %s2693_s30, 4  ;;  %s24_s10 = int_to_ptr.vmem [resolvable:$true] %s23_s10 }
   0x3   :  { %s2631_s11 = scalar_lea.vmem %s24_s10, 6144  ;;  %p2636_p1 = scmp.lt.s32.totalorder %s24_s10, %s24_s10 }
   0x4   :  { %p2632_p0 = scmp.ne.s32.totalorder %s24_s10, %s2631_s11  ;;  %p2637_p2 = scmp.lt.s32.totalorder %s2631_s11, %s2631_s11 }
   0x6   :  { %p2638_p3 = por %p2637_p2, %p2636_p1 }
   0x8   :  { %p2639_p4 = pnand %p2638_p3, %p2632_p0 }
   0xa   :  { %2642 = shalt.err (!%p2639_p4)
}
   0xb   :  { %s2694_s12 = smov 128   ;;  %s2695_s13 = smov 8  }
   0xc   :  { %29 = dma.hbm_to_vmem [thread:$0]  %s3626_s1, 6144, %s24_s10, [#allocation9], %s2694_s12, %s2694_s12, %s2695_s13  }
   0xd   :  { %2683 = dma.done.wait [#allocation9], 6144  }
   0xe   :  { %2684 = vsyncadd [#allocation9], 4294961152  ;;  %s2696_s16 = smov [#allocation4]  }
   0xf   :  { %s49_s17 = sshll.u32 %s2696_s16, 4  ;;  %s50_s17 = int_to_ptr.vmem [resolvable:$true] %s49_s17 }
  0x10   :  { %s2651_s18 = scalar_lea.vmem %s50_s17, 6144  ;;  %p2656_p6 = scmp.lt.s32.totalorder %s50_s17, %s50_s17 }
  0x11   :  { %p2652_p5 = scmp.ne.s32.totalorder %s50_s17, %s2651_s18  ;;  %p2657_p7 = scmp.lt.s32.totalorder %s2651_s18, %s2651_s18 }
  0x13   :  { %p2658_p8 = por %p2657_p7, %p2656_p6 }
  0x15   :  { %p2659_p9 = pnand %p2658_p8, %p2652_p5 }
  0x17   :  { %2662 = shalt.err (!%p2659_p9)  }
  0x18   :  { %52 = dma.hbm_to_vmem [thread:$0]  %s3631_s6, 6144, %s50_s17, [#allocation7]  ;;  %v2760_v0 = vld [vmem:[%s3632_s7] sm:$0xff]  ;;  %v2765_v1 = vld [vmem:[%s3632_s7 + $0x8] sm:$0xff]  ;;  %v2770_v2 = vld [vmem:[%s3632_s7 + $0x10] sm:$0xff] }
  0x19   :  { %3666 = vst [vmem:[#allocation23_spill] sm:$0xff] %v2760_v0  ;;  %3667 = vst [vmem:[#allocation24_spill] sm:$0xff] %v2765_v1  ;;  %v2775_v3 = vld [vmem:[%s3632_s7 + $0x18] sm:$0xff]  ;;  %v2780_v4 = vld [vmem:[%s3632_s7 + $0x20] sm:$0xff] }
  0x1a   :  { %3668 = vst [vmem:[#allocation25_spill] sm:$0xff] %v2770_v2  ;;  %3669 = vst [vmem:[#allocation26_spill] sm:$0xff] %v2775_v3  ;;  %v2785_v5 = vld [vmem:[%s3632_s7 + $0x28] sm:$0xff]  ;;  %v2790_v6 = vld [vmem:[%s3632_s7 + $0x30] sm:$0xff] }
  0x1b   :  { %3670 = vst [vmem:[#allocation27_spill] sm:$0xff] %v2780_v4  ;;  %3671 = vst [vmem:[#allocation28_spill] sm:$0xff] %v2785_v5  ;;  %v2795_v7 = vld [vmem:[%s3632_s7 + $0x38] sm:$0xff]  ;;  %v2800_v8 = vld [vmem:[%s3632_s7 + $0x40] sm:$0xff] }
  0x1c   :  { %v2805_v9 = vld [vmem:[%s3632_s7 + $0x48] sm:$0xff]  ;;  %v2810_v10 = vld [vmem:[%s3632_s7 + $0x50] sm:$0xff]  ;;  %v2815_v11 = vld [vmem:[%s3632_s7 + $0x58] sm:$0xff] }
  0x1d   :  { %v2820_v12 = vld [vmem:[%s3632_s7 + $0x60] sm:$0xff]  ;;  %v2825_v13 = vld [vmem:[%s3632_s7 + $0x68] sm:$0xff]  ;;  %v2830_v14 = vld [vmem:[%s3632_s7 + $0x70] sm:$0xff] }
  0x1e   :  { %v2835_v15 = vld [vmem:[%s3632_s7 + $0x78] sm:$0xff]  ;;  %v2840_v16 = vld [vmem:[%s3632_s7 + $0x80] sm:$0xff]  ;;  %v2845_v17 = vld [vmem:[%s3632_s7 + $0x88] sm:$0xff] }
  0x1f   :  { %3672 = vst [vmem:[#allocation29_spill] sm:$0xff] %v2840_v16  ;;  %3673 = vst [vmem:[#allocation30_spill] sm:$0xff] %v2845_v17  ;;  %v2850_v18 = vld [vmem:[%s3632_s7 + $0x90] sm:$0xff]  ;;  %v2855_v19 = vld [vmem:[%s3632_s7 + $0x98] sm:$0xff] }
  0x20   :  { %3674 = vst [vmem:[#allocation31_spill] sm:$0xff] %v2850_v18  ;;  %3675 = vst [vmem:[#allocation32_spill] sm:$0xff] %v2855_v19  ;;  %v2860_v20 = vld [vmem:[%s3632_s7 + $0xa0] sm:$0xff]  ;;  %v2865_v21 = vld [vmem:[%s3632_s7 + $0xa8] sm:$0xff] }
  0x21   :  { %3676 = vst [vmem:[#allocation33_spill] sm:$0xff] %v2860_v20  ;;  %v2870_v22 = vld [vmem:[%s3632_s7 + $0xb0] sm:$0xff]  ;;  %v2875_v23 = vld [vmem:[%s3632_s7 + $0xb8] sm:$0xff]  ;;  %v2880_v24 = vld [vmem:[%s3632_s7 + $0xc0] sm:$0xff] }
  0x22   :  { %v2885_v25 = vld [vmem:[%s3632_s7 + $0xc8] sm:$0xff]  ;;  %v2890_v26 = vld [vmem:[%s3632_s7 + $0xd0] sm:$0xff]  ;;  %v2895_v27 = vld [vmem:[%s3632_s7 + $0xd8] sm:$0xff] }
  0x23   :  { %v2900_v28 = vld [vmem:[%s3632_s7 + $0xe0] sm:$0xff]  ;;  %v2905_v29 = vld [vmem:[%s3632_s7 + $0xe8] sm:$0xff]  ;;  %v2910_v30 = vld [vmem:[%s3632_s7 + $0xf0] sm:$0xff] }
  0x24   :  { %v2915_v31 = vld [vmem:[%s3632_s7 + $0xf8] sm:$0xff]  ;;  %v2920_v32 = vld [vmem:[%s3632_s7 + $0x100] sm:$0xff]  ;;  %v2925_v33 = vld [vmem:[%s3632_s7 + $0x108] sm:$0xff] }
  0x25   :  { %3677 = vst [vmem:[#allocation34_spill] sm:$0xff] %v2920_v32  ;;  %3678 = vst [vmem:[#allocation35_spill] sm:$0xff] %v2925_v33  ;;  %v2930_v34 = vld [vmem:[%s3632_s7 + $0x110] sm:$0xff]  ;;  %v2935_v35 = vld [vmem:[%s3632_s7 + $0x118] sm:$0xff] }
  0x26   :  { %3679 = vst [vmem:[#allocation36_spill] sm:$0xff] %v2930_v34  ;;  %3680 = vst [vmem:[#allocation37_spill] sm:$0xff] %v2935_v35  ;;  %v2940_v36 = vld [vmem:[%s3632_s7 + $0x120] sm:$0xff]  ;;  %v2945_v37 = vld [vmem:[%s3632_s7 + $0x128] sm:$0xff] }
  0x27   :  { %3681 = vst [vmem:[#allocation38_spill] sm:$0xff] %v2940_v36  ;;  %3682 = vst [vmem:[#allocation39_spill] sm:$0xff] %v2945_v37  ;;  %v2950_v38 = vld [vmem:[%s3632_s7 + $0x130] sm:$0xff]  ;;  %v2955_v39 = vld [vmem:[%s3632_s7 + $0x138] sm:$0xff] }
  0x28   :  { %3683 = vst [vmem:[#allocation40_spill] sm:$0xff] %v2950_v38  ;;  %3684 = vst [vmem:[#allocation41_spill] sm:$0xff] %v2955_v39  ;;  %v2960_v40 = vld [vmem:[%s3632_s7 + $0x140] sm:$0xff]  ;;  %v2965_v41 = vld [vmem:[%s3632_s7 + $0x148] sm:$0xff] }
  0x29   :  { %3685 = vst [vmem:[#allocation42_spill] sm:$0xff] %v2960_v40  ;;  %3686 = vst [vmem:[#allocation43_spill] sm:$0xff] %v2965_v41  ;;  %v2970_v42 = vld [vmem:[%s3632_s7 + $0x150] sm:$0xff]  ;;  %v2975_v43 = vld [vmem:[%s3632_s7 + $0x158] sm:$0xff] }
  0x2a   :  { %3687 = vst [vmem:[#allocation44_spill] sm:$0xff] %v2970_v42  ;;  %3688 = vst [vmem:[#allocation45_spill] sm:$0xff] %v2975_v43  ;;  %v2980_v44 = vld [vmem:[%s3632_s7 + $0x160] sm:$0xff]  ;;  %v2985_v45 = vld [vmem:[%s3632_s7 + $0x168] sm:$0xff] }
  0x2b   :  { %3689 = vst [vmem:[#allocation46_spill] sm:$0xff] %v2980_v44  ;;  %3690 = vst [vmem:[#allocation47_spill] sm:$0xff] %v2985_v45  ;;  %v2990_v46 = vld [vmem:[%s3632_s7 + $0x170] sm:$0xff]  ;;  %v2995_v47 = vld [vmem:[%s3632_s7 + $0x178] sm:$0xff] }
  0x2c   :  { %3691 = vst [vmem:[#allocation48_spill] sm:$0xff] %v2990_v46  ;;  %3692 = vst [vmem:[#allocation49_spill] sm:$0xff] %v2995_v47 }
  0x2d   :  { %190 = vsyncadd [#allocation7 + $0x1], 6144  ;;  %v225_v48 = vld [vmem:[%s3633_s8] sm:$0xff]  ;;  %v227_v49 = vld [vmem:[%s3633_s8 + $0x8] sm:$0xff] }
  0x2e   :  { %226 = vst [vmem:[#allocation6] sm:$0xff] %v225_v48  ;;  %228 = vst [vmem:[#allocation6 + $0x8] sm:$0xff] %v227_v49  ;;  %v229_v50 = vld [vmem:[%s3633_s8 + $0x10] sm:$0xff]  ;;  %v231_v51 = vld [vmem:[%s3633_s8 + $0x18] sm:$0xff] }
  0x2f   :  { %v233_v52 = vld [vmem:[%s3633_s8 + $0x20] sm:$0xff]  ;;  %230 = vst [vmem:[#allocation6 + $0x10] sm:$0xff] %v229_v50  ;;  %232 = vst [vmem:[#allocation6 + $0x18] sm:$0xff] %v231_v51  ;;  %v235_v53 = vld [vmem:[%s3633_s8 + $0x28] sm:$0xff] }
  0x30   :  { %234 = vst [vmem:[#allocation6 + $0x20] sm:$0xff] %v233_v52  ;;  %v237_v54 = vld [vmem:[%s3633_s8 + $0x30] sm:$0xff]  ;;  %v239_v55 = vld [vmem:[%s3633_s8 + $0x38] sm:$0xff]  ;;  %236 = vst [vmem:[#allocation6 + $0x28] sm:$0xff] %v235_v53 }
  0x31   :  { %238 = vst [vmem:[#allocation6 + $0x30] sm:$0xff] %v237_v54  ;;  %240 = vst [vmem:[#allocation6 + $0x38] sm:$0xff] %v239_v55 }
  0x32   :  { %248 = vsyncadd [#allocation7 + $0x2], 1024  ;;  %v3635_v56 = vmov 0.0   ;;  %v3029_v57 = vld [vmem:[#allocation8 + $0xf4] ss:$8 sps:$4 sm:$0xff]   ;;  %v3637_v58 = vmov 0  }
  0x33   :  { %249 = vst [vmem:[#allocation2] sm:$0x1] %v3635_v56  ;;  %250 = vst [vmem:[#allocation2 + $0x9] sm:$0x1] %v3635_v56  ;;  %433 = vmatprep.mubr.bf16.mxu0 %v3637_v58  ;;  %564 = vmatprep.mubr.bf16.mxu1 %v3637_v58  ;;  %v3033_v59 = vld [vmem:[#allocation8 + $0x74] ss:$8 sps:$4 sm:$0xff]  }
  0x34   :  { %251 = vst [vmem:[#allocation3] sm:$0x1] %v3635_v56  ;;  %252 = vst [vmem:[#allocation3 + $0x5] sm:$0x1] %v3635_v56  ;;  %v3035_v60 = vld [vmem:[#allocation8 + $0xf0] ss:$8 sps:$4 sm:$0xff]   ;;  %401 = vmatprep.subr.bf16.mxu0 %v3029_v57  ;;  %532 = vmatprep.subr.bf16.mxu1 %v3033_v59 }
  0x35   :  { %253 = vst [vmem:[#allocation2 + $0xa] sm:$0x1] %v3635_v56  ;;  %254 = vst [vmem:[#allocation2 + $0x13] sm:$0x1] %v3635_v56  ;;  %v3037_v61 = vld [vmem:[#allocation8 + $0x70] ss:$8 sps:$4 sm:$0xff]   ;;  %402 = vmatpush1.bf16.msra.mxu0 %v3035_v60 }
  0x36   :  { %255 = vst [vmem:[#allocation3 + $0x6] sm:$0x1] %v3635_v56  ;;  %256 = vst [vmem:[#allocation3 + $0xb] sm:$0x1] %v3635_v56  ;;  %v3040_v62 = vld [vmem:[#allocation8 + $0xe4] ss:$8 sps:$4 sm:$0xff]   ;;  %533 = vmatpush1.bf16.msra.mxu1 %v3037_v61 }
  0x37   :  { %v3044_v63 = vld [vmem:[#allocation8 + $0x64] ss:$8 sps:$4 sm:$0xff]   ;;  %403 = vmatprep.subr.bf16.mxu0 %v3040_v62  ;;  %v3048_v48 = vld [vmem:[#allocation8 + $0xe0] ss:$8 sps:$4 sm:$0xff]   ;;  %v3053_v50 = vld [vmem:[#allocation8 + $0xd4] ss:$8 sps:$4 sm:$0xff]  }
  0x38   :  { %v3050_v49 = vld [vmem:[#allocation8 + $0x60] ss:$8 sps:$4 sm:$0xff]   ;;  %534 = vmatprep.subr.bf16.mxu1 %v3044_v63  ;;  %v3055_v51 = vld [vmem:[#allocation8 + $0x54] ss:$8 sps:$4 sm:$0xff]   ;;  %v3057_v52 = vld [vmem:[#allocation8 + $0xd0] ss:$8 sps:$4 sm:$0xff]  }
  0x39   :  { %404 = vmatpush1.bf16.msra.mxu0 %v3048_v48  ;;  %v3060_v53 = vld [vmem:[#allocation8 + $0x50] ss:$8 sps:$4 sm:$0xff]   ;;  %v3064_v54 = vld [vmem:[#allocation8 + $0xc4] ss:$8 sps:$4 sm:$0xff]   ;;  %v3070_v56 = vld [vmem:[#allocation8 + $0xc0] ss:$8 sps:$4 sm:$0xff]  }
  0x3a   :  { %535 = vmatpush1.bf16.msra.mxu1 %v3050_v49  ;;  %405 = vmatprep.subr.bf16.mxu0 %v3053_v50  ;;  %v3067_v55 = vld [vmem:[#allocation8 + $0x44] ss:$8 sps:$4 sm:$0xff]   ;;  %v3074_v58 = vld [vmem:[#allocation8 + $0x40] ss:$8 sps:$4 sm:$0xff]   ;;  %v3076_v32 = vld [vmem:[#allocation8 + $0xb4] ss:$8 sps:$4 sm:$0xff]  }
  0x3b   :  { %536 = vmatprep.subr.bf16.mxu1 %v3055_v51  ;;  %v3079_v33 = vld [vmem:[#allocation8 + $0x34] ss:$8 sps:$4 sm:$0xff]   ;;  %v3081_v34 = vld [vmem:[#allocation8 + $0xb0] ss:$8 sps:$4 sm:$0xff]   ;;  %v3088_v36 = vld [vmem:[#allocation8 + $0xa4] ss:$8 sps:$4 sm:$0xff]  }
  0x3c   :  { %v3084_v35 = vld [vmem:[#allocation8 + $0x30] ss:$8 sps:$4 sm:$0xff]   ;;  %v3091_v37 = vld [vmem:[#allocation8 + $0x24] ss:$8 sps:$4 sm:$0xff]   ;;  %v3094_v38 = vld [vmem:[#allocation8 + $0xa0] ss:$8 sps:$4 sm:$0xff]  }
  0x3d   :  { %406 = vmatpush1.bf16.msra.mxu0 %v3057_v52  ;;  %v3098_v39 = vld [vmem:[#allocation8 + $0x20] ss:$8 sps:$4 sm:$0xff]   ;;  %v3100_v40 = vld [vmem:[#allocation8 + $0x94] ss:$8 sps:$4 sm:$0xff]   ;;  %v3105_v42 = vld [vmem:[#allocation8 + $0x90] ss:$8 sps:$4 sm:$0xff]  }
  0x3e   :  { %537 = vmatpush1.bf16.msra.mxu1 %v3060_v53  ;;  %407 = vmatprep.subr.bf16.mxu0 %v3064_v54  ;;  %v3103_v41 = vld [vmem:[#allocation8 + $0x14] ss:$8 sps:$4 sm:$0xff]   ;;  %v3108_v43 = vld [vmem:[#allocation8 + $0x10] ss:$8 sps:$4 sm:$0xff]   ;;  %v3112_v44 = vld [vmem:[#allocation8 + $0x84] ss:$8 sps:$4 sm:$0xff]  }
  0x3f   :  { %538 = vmatprep.subr.bf16.mxu1 %v3067_v55  ;;  %v3114_v45 = vld [vmem:[#allocation8 + $0x4] ss:$8 sps:$4 sm:$0xff]   ;;  %v3117_v46 = vld [vmem:[#allocation8 + $0x80] ss:$8 sps:$4 sm:$0xff]   ;;  %v3136_v2 = vld [vmem:[#allocation8 + $0x174] ss:$8 sps:$4 sm:$0xff]  }
  0x40   :  { %v2266_v47 = vld [vmem:[%s3625_s0 + $0x1] ss:$2 sm:$0xff]  ;;  %v2267_v1 = vld [vmem:[%s3625_s0 + $0x11] ss:$2 sm:$0xff]  ;;  %v257_v16 = vld [vmem:[%s3625_s0] ss:$2 sm:$0xff] }
  0x41   :  { %408 = vmatpush1.bf16.msra.mxu0 %v3070_v56  ;;  %v3122_v0 = vld [vmem:[#allocation8] ss:$8 sps:$4 sm:$0xff]   ;;  %v3139_v3 = vpack.c.bf16 %v2267_v1, %v2266_v47  ;;  %v3142_v19 = vld [vmem:[#allocation8 + $0x170] ss:$8 sps:$4 sm:$0xff]   ;;  %v3146_v4 = vld [vmem:[#allocation8 + $0x164] ss:$8 sps:$4 sm:$0xff]  }
  0x42   :  { %539 = vmatpush1.bf16.msra.mxu1 %v3074_v58  ;;  %409 = vmatprep.subr.bf16.mxu0 %v3076_v32  ;;  %v2264_v17 = vld [vmem:[%s3625_s0 + $0x10] ss:$2 sm:$0xff]  ;;  %v2265_v47 = vld [vmem:[%s3625_s0 + $0x20] ss:$2 sm:$0x1] }
  0x43   :  { %540 = vmatprep.subr.bf16.mxu1 %v3079_v33  ;;  %v262_v18 = vpack.c.bf16 %v2264_v17, %v257_v16  ;;  %v3151_v1 = vld [vmem:[#allocation8 + $0x160] ss:$8 sps:$4 sm:$0xff]   ;;  %v2268_v16 = vld [vmem:[%s3625_s0 + $0x21] ss:$2 sm:$0x1] }
  0x44   :  { %v3158_v17 = vld [vmem:[#allocation8 + $0x154] ss:$8 sps:$4 sm:$0xff]   ;;  %v2525_v5 = vld [vmem:[#allocation8 + $0x150] ss:$8 sps:$4 sm:$0xff]   ;;  %v2530_v20 = vld [vmem:[#allocation8 + $0x144] ss:$8 sps:$4 sm:$0xff]  }
  0x45   :  { %410 = vmatpush1.bf16.msra.mxu0 %v3081_v34 }
  0x46   :  { %541 = vmatpush1.bf16.msra.mxu1 %v3084_v35  ;;  %411 = vmatprep.subr.bf16.mxu0 %v3088_v36 }
  0x47   :  { %542 = vmatprep.subr.bf16.mxu1 %v3091_v37 }
  0x49   :  { %412 = vmatpush1.bf16.msra.mxu0 %v3094_v38 }
  0x4a   :  { %543 = vmatpush1.bf16.msra.mxu1 %v3098_v39  ;;  %413 = vmatprep.subr.bf16.mxu0 %v3100_v40 }
  0x4b   :  { %544 = vmatprep.subr.bf16.mxu1 %v3103_v41 }
  0x4d   :  { %414 = vmatpush1.bf16.msra.mxu0 %v3105_v42 }
  0x4e   :  { %545 = vmatpush1.bf16.msra.mxu1 %v3108_v43  ;;  %415 = vmatprep.subr.bf16.mxu0 %v3112_v44 }
  0x4f   :  { %546 = vmatprep.subr.bf16.mxu1 %v3114_v45 }
  0x51   :  { %416 = vmatpush1.bf16.msra.mxu0 %v3117_v46 }
  0x52   :  { %547 = vmatpush1.bf16.msra.mxu1 %v3122_v0  ;;  %680 = vmatprep.subr.bf16.mxu0 %v3136_v2 }
  0x53   :  { %737 = vmatprep.subr.bf16.mxu1 %v3029_v57  ;;  %v3165_v57 = vpack.c.bf16 %v2268_v16, %v2268_v16  ;;  %v2533_v16 = vld [vmem:[#allocation8 + $0x134] ss:$8 sps:$4 sm:$0xff]  }
  0x54   :  { %434 = vmatmul.mubr.bf16.vlgmr.msra.gmra.mxu0 %v3139_v3 }
  0x55   :  { %565 = vmatmul.mubr.bf16.vlgmr.msra.gmra.mxu1 %v262_v18  ;;  %681 = vmatpush1.bf16.msra.mxu0 %v3142_v19  ;;  %v3693_v18 = vmov 0  }
  0x56   :  { %738 = vmatpush1.bf16.msra.mxu1 %v3035_v60  ;;  %682 = vmatprep.subr.bf16.mxu0 %v3146_v4  ;;  %v263_v60 = vpack.c.bf16 %v2265_v47, %v2265_v47  ;;  %v2534_v47 = vld [vmem:[#allocation8 + $0x120] ss:$8 sps:$4 sm:$0xff]  }
  0x57   :  { %739 = vmatprep.subr.bf16.mxu1 %v3040_v62  ;;  %443 = vmatprep.mubr.bf16.mxu0 %v3693_v18  ;;  %v2528_v62 = vld [vmem:[#allocation8 + $0x140] ss:$8 sps:$4 sm:$0xff]  }
  0x58   :  { %574 = vmatprep.mubr.bf16.mxu1 %v3693_v18 }
  0x59   :  { %683 = vmatpush1.bf16.msra.mxu0 %v3151_v1 }
  0x5a   :  { %740 = vmatpush1.bf16.msra.mxu1 %v3048_v48  ;;  %684 = vmatprep.subr.bf16.mxu0 %v3158_v17  ;;  %v2531_v48 = vld [vmem:[#allocation8 + $0x130] ss:$8 sps:$4 sm:$0xff]  }
  0x5b   :  { %741 = vmatprep.subr.bf16.mxu1 %v3053_v50  ;;  %v2536_v50 = vld [vmem:[#allocation8 + $0x124] ss:$8 sps:$4 sm:$0xff]  }
  0x5c   :  { %444 = vmatmul.mubr.bf16.gmra.mxu0 %v3165_v57 }
  0x5d   :  { %685 = vmatpush1.bf16.msra.mxu0 %v2525_v5  ;;  %575 = vmatmul.mubr.bf16.gmra.mxu1 %v263_v60  ;;  %v2542_v60 = vld [vmem:[#allocation8 + $0x104] ss:$8 sps:$4 sm:$0xff]  }
  0x5e   :  { %742 = vmatpush1.bf16.msra.mxu1 %v3057_v52  ;;  %686 = vmatprep.subr.bf16.mxu0 %v2530_v20  ;;  %v2539_v52 = vld [vmem:[#allocation8 + $0x114] ss:$8 sps:$4 sm:$0xff]  }
  0x5f   :  { %743 = vmatprep.subr.bf16.mxu1 %v3064_v54  ;;  %712 = vmatprep.mubr.bf16.mxu0 %v3693_v18  ;;  %v2537_v54 = vld [vmem:[#allocation8 + $0x110] ss:$8 sps:$4 sm:$0xff]  }
  0x60   :  { %769 = vmatprep.mubr.bf16.mxu1 %v3693_v18 }
  0x61   :  { %687 = vmatpush1.bf16.msra.mxu0 %v2528_v62 }
  0x62   :  { %744 = vmatpush1.bf16.msra.mxu1 %v3070_v56  ;;  %688 = vmatprep.subr.bf16.mxu0 %v2533_v16  ;;  %v2540_v56 = vld [vmem:[#allocation8 + $0x100] ss:$8 sps:$4 sm:$0xff]  }
  0x63   :  { %745 = vmatprep.subr.bf16.mxu1 %v3076_v32  ;;  %v2269_v32 = vld [vmem:[%s3625_s0 + $0x2] ss:$2 sm:$0xff] }
  0x65   :  { %689 = vmatpush1.bf16.msra.mxu0 %v2531_v48 }
  0x66   :  { %746 = vmatpush1.bf16.msra.mxu1 %v3081_v34  ;;  %690 = vmatprep.subr.bf16.mxu0 %v2536_v50  ;;  %v2270_v34 = vld [vmem:[%s3625_s0 + $0x12] ss:$2 sm:$0xff] }
  0x67   :  { %747 = vmatprep.subr.bf16.mxu1 %v3088_v36  ;;  %v278_v36 = vpack.c.bf16 %v2270_v34, %v2269_v32 }
  0x69   :  { %691 = vmatpush1.bf16.msra.mxu0 %v2534_v47 }
  0x6a   :  { %748 = vmatpush1.bf16.msra.mxu1 %v3094_v38  ;;  %692 = vmatprep.subr.bf16.mxu0 %v2539_v52  ;;  %v2271_v38 = vld [vmem:[%s3625_s0 + $0x22] ss:$2 sm:$0x1] }
  0x6b   :  { %749 = vmatprep.subr.bf16.mxu1 %v3100_v40  ;;  %v279_v40 = vpack.c.bf16 %v2271_v38, %v2271_v38 }
  0x6d   :  { %693 = vmatpush1.bf16.msra.mxu0 %v2537_v54 }
  0x6e   :  { %750 = vmatpush1.bf16.msra.mxu1 %v3105_v42  ;;  %694 = vmatprep.subr.bf16.mxu0 %v2542_v60 }
  0x6f   :  { %751 = vmatprep.subr.bf16.mxu1 %v3112_v44 }
  0x71   :  { %695 = vmatpush1.bf16.msra.mxu0 %v2540_v56 }
  0x72   :  { %752 = vmatpush1.bf16.msra.mxu1 %v3117_v46  ;;  %788 = vmatprep.subr.bf16.mxu0 %v3033_v59 }
  0x73   :  { %839 = vmatprep.subr.bf16.mxu1 %v3136_v2  ;;  %v2272_v2 = vld [vmem:[%s3625_s0 + $0x3] ss:$2 sm:$0xff] }
  0x74   :  { %713 = vmatmul.mubr.bf16.vlgmr.msra.gmra.mxu0 %v278_v36 }
  0x75   :  { %770 = vmatmul.mubr.bf16.vlgmr.msra.gmra.mxu1 %v278_v36  ;;  %789 = vmatpush1.bf16.msra.mxu0 %v3037_v61 }
  0x76   :  { %840 = vmatpush1.bf16.msra.mxu1 %v3142_v19  ;;  %790 = vmatprep.subr.bf16.mxu0 %v3044_v63  ;;  %v2274_v19 = vld [vmem:[%s3625_s0 + $0x23] ss:$2 sm:$0x1] }
  0x77   :  { %841 = vmatprep.subr.bf16.mxu1 %v3146_v4  ;;  %722 = vmatprep.mubr.bf16.mxu0 %v3693_v18  ;;  %v2273_v4 = vld [vmem:[%s3625_s0 + $0x13] ss:$2 sm:$0xff] }
  0x78   :  { %779 = vmatprep.mubr.bf16.mxu1 %v3693_v18 }
  0x79   :  { %791 = vmatpush1.bf16.msra.mxu0 %v3050_v49 }
  0x7a   :  { %842 = vmatpush1.bf16.msra.mxu1 %v3151_v1  ;;  %792 = vmatprep.subr.bf16.mxu0 %v3055_v51 }
  0x7b   :  { %843 = vmatprep.subr.bf16.mxu1 %v3158_v17 }
  0x7c   :  { %723 = vmatmul.mubr.bf16.gmra.mxu0 %v279_v40 }
  0x7d   :  { %793 = vmatpush1.bf16.msra.mxu0 %v3060_v53  ;;  %780 = vmatmul.mubr.bf16.gmra.mxu1 %v279_v40 }
  0x7e   :  { %844 = vmatpush1.bf16.msra.mxu1 %v2525_v5  ;;  %794 = vmatprep.subr.bf16.mxu0 %v3067_v55  ;;  %v286_v5 = vpack.c.bf16 %v2273_v4, %v2272_v2 }
  0x7f   :  { %845 = vmatprep.subr.bf16.mxu1 %v2530_v20  ;;  %820 = vmatprep.mubr.bf16.mxu0 %v3693_v18  ;;  %v287_v20 = vpack.c.bf16 %v2274_v19, %v2274_v19 }
  0x80   :  { %871 = vmatprep.mubr.bf16.mxu1 %v3693_v18 }
  0x81   :  { %795 = vmatpush1.bf16.msra.mxu0 %v3074_v58 }
  0x82   :  { %846 = vmatpush1.bf16.msra.mxu1 %v2528_v62  ;;  %796 = vmatprep.subr.bf16.mxu0 %v3079_v33 }
  0x83   :  { %847 = vmatprep.subr.bf16.mxu1 %v2533_v16 }
  0x85   :  { %797 = vmatpush1.bf16.msra.mxu0 %v3084_v35 }
  0x86   :  { %848 = vmatpush1.bf16.msra.mxu1 %v2531_v48  ;;  %798 = vmatprep.subr.bf16.mxu0 %v3091_v37 }
  0x87   :  { %849 = vmatprep.subr.bf16.mxu1 %v2536_v50 }
  0x89   :  { %799 = vmatpush1.bf16.msra.mxu0 %v3098_v39 }
  0x8a   :  { %850 = vmatpush1.bf16.msra.mxu1 %v2534_v47  ;;  %800 = vmatprep.subr.bf16.mxu0 %v3103_v41 }
  0x8b   :  { %851 = vmatprep.subr.bf16.mxu1 %v2539_v52 }
  0x8d   :  { %801 = vmatpush1.bf16.msra.mxu0 %v3108_v43 }
  0x8e   :  { %852 = vmatpush1.bf16.msra.mxu1 %v2537_v54  ;;  %802 = vmatprep.subr.bf16.mxu0 %v3114_v45 }
  0x8f   :  { %853 = vmatprep.subr.bf16.mxu1 %v2542_v60 }
  0x91   :  { %803 = vmatpush1.bf16.msra.mxu0 %v3122_v0 }
  0x92   :  { %854 = vmatpush1.bf16.msra.mxu1 %v2540_v56 }
  0x94   :  { %821 = vmatmul.mubr.bf16.vlgmr.msra.gmra.mxu0 %v3139_v3 }
  0x95   :  { %872 = vmatmul.mubr.bf16.vlgmr.msra.gmra.mxu1 %v286_v5  ;;  %830 = vmatprep.mubr.bf16.mxu0 %v3693_v18 }
  0x96   :  { %881 = vmatprep.mubr.bf16.mxu1 %v3693_v18 }
  0x9c   :  { %831 = vmatmul.mubr.bf16.gmra.mxu0 %v3165_v57 }
  0x9d   :  { %882 = vmatmul.mubr.bf16.gmra.mxu1 %v287_v20 }
 0x114   :  { %v435_v33 = vpop.f32.mrf.mxu0 }
 0x115   :  { %v566_v35 = vpop.f32.mrf.mxu1 }
 0x116   :  { %v567_v0 = vadd.f32 %v566_v35, %v435_v33  ;;  %v437_v37 = vpop.f32.mrf.mxu0 }
 0x117   :  { %v568_v39 = vpop.f32.mrf.mxu1 }
 0x118   :  { %v439_v41 = vpop.f32.mrf.mxu0  ;;  %v569_v5 = vadd.f32 %v568_v39, %v437_v37  ;;  %v2323_v37 = vld [vmem:[%s3627_s2] ss:$0 sm:$0xff] }
 0x119   :  { %v570_v3 = vpop.f32.mrf.mxu1 }
 0x11a   :  { %v571_v42 = vadd.f32 %v570_v3, %v439_v41  ;;  %v441_v43 = vpop.f32.mrf.mxu0 }
 0x11b   :  { %v572_v44 = vpop.f32.mrf.mxu1 }
 0x11c   :  { %v445_v45 = vpop.f32.mrf.mxu0 }
 0x11d   :  { %v576_v46 = vpop.f32.mrf.mxu1 }
 0x11e   :  { %v447_v58 = vpop.f32.mrf.mxu0  ;;  %v577_v59 = vadd.f32 %v576_v46, %v445_v45 }
 0x11f   :  { %v578_v61 = vpop.f32.mrf.mxu1 }
 0x120   :  { %v449_v63 = vpop.f32.mrf.mxu0 }
 0x121   :  { %v580_v49 = vpop.f32.mrf.mxu1 }
 0x122   :  { %v450_v51 = vpop.f32.mrf.mxu0  ;;  %v573_v49 = vadd.f32 %v572_v44, %v441_v43 }
 0x123   :  { %v581_v53 = vpop.f32.mrf.mxu1 }
 0x134   :  { %v714_v55 = vpop.f32.mrf.mxu0 }
 0x135   :  { %v771_v1 = vpop.f32.mrf.mxu1  ;;  %v731_v41 = vadd.f32 %v714_v55, %v567_v0 }
 0x136   :  { %v716_v17 = vpop.f32.mrf.mxu0 }
 0x137   :  { %v773_v57 = vpop.f32.mrf.mxu1  ;;  %v732_v3 = vadd.f32 %v716_v17, %v569_v5 }
 0x138   :  { %v718_v62 = vpop.f32.mrf.mxu0 }
 0x139   :  { %v775_v16 = vpop.f32.mrf.mxu1 }
 0x13a   :  { %v720_v48 = vpop.f32.mrf.mxu0 }
 0x13b   :  { %v777_v50 = vpop.f32.mrf.mxu1 }
 0x13c   :  { %v724_v47 = vpop.f32.mrf.mxu0 }
 0x13d   :  { %v781_v52 = vpop.f32.mrf.mxu1 }
 0x13e   :  { %v726_v54 = vpop.f32.mrf.mxu0 }
 0x13f   :  { %v783_v60 = vpop.f32.mrf.mxu1 }
 0x140   :  { %v728_v56 = vpop.f32.mrf.mxu0 }
 0x141   :  { %v785_v32 = vpop.f32.mrf.mxu1 }
 0x142   :  { %v729_v34 = vpop.f32.mrf.mxu0 }
 0x143   :  { %v786_v36 = vpop.f32.mrf.mxu1 }
 0x154   :  { %v822_v38 = vpop.f32.mrf.mxu0 }
 0x155   :  { %v823_v40 = vadd.f32 %v822_v38, %v771_v1  ;;  %v873_v2 = vpop.f32.mrf.mxu1  ;;  %v733_v1 = vadd.f32 %v718_v62, %v571_v42 }
 0x156   :  { %v824_v4 = vpop.f32.mrf.mxu0 }
 0x157   :  { %v890_v19 = vadd.f32 %v873_v2, %v823_v40  ;;  %v825_v20 = vadd.f32 %v824_v4, %v773_v57  ;;  %v875_v33 = vpop.f32.mrf.mxu1  ;;  %v734_v57 = vadd.f32 %v720_v48, %v573_v49 }
 0x158   :  { %v826_v35 = vpop.f32.mrf.mxu0 }
 0x159   :  { %v891_v45 = vadd.f32 %v875_v33, %v825_v20  ;;  %v827_v46 = vadd.f32 %v826_v35, %v775_v16  ;;  %v877_v63 = vpop.f32.mrf.mxu1  ;;  %v896_v53 = vmax.f32 %v731_v41, %v890_v19  ;;  %v579_v16 = vadd.f32 %v578_v61, %v447_v58 }
 0x15a   :  { %v828_v51 = vpop.f32.mrf.mxu0  ;;  %v735_v19 = vadd.f32 %v724_v47, %v577_v59 }
 0x15b   :  { %v897_v56 = vmax.f32 %v732_v3, %v891_v45  ;;  %v892_v32 = vadd.f32 %v877_v63, %v827_v46  ;;  %v829_v34 = vadd.f32 %v828_v51, %v777_v50  ;;  %v879_v36 = vpop.f32.mrf.mxu1  ;;  %v736_v62 = vadd.f32 %v726_v54, %v579_v16 }
 0x15c   :  { %v832_v39 = vpop.f32.mrf.mxu0 }
 0x15d   :  { %v902_v38 = vmax.f32 %v896_v53, %v897_v56  ;;  %v893_v0 = vadd.f32 %v879_v36, %v829_v34  ;;  %v833_v55 = vadd.f32 %v832_v39, %v781_v52  ;;  %v883_v17 = vpop.f32.mrf.mxu1  ;;  %v898_v40 = vmax.f32 %v733_v1, %v892_v32 }
 0x15e   :  { %v834_v43 = vpop.f32.mrf.mxu0 }
 0x15f   :  { %v912_v44 = vadd.f32 %v2323_v37, %v902_v38  ;;  %v899_v2 = vmax.f32 %v734_v57, %v893_v0  ;;  %v894_v4 = vadd.f32 %v883_v17, %v833_v55  ;;  %v835_v5 = vadd.f32 %v834_v43, %v783_v60  ;;  %v885_v50 = vpop.f32.mrf.mxu1 }
 0x160   :  { %v836_v42 = vpop.f32.mrf.mxu0 }
 0x161   :  { %v915_v20 = vmax.f32 %v912_v44, 0.0  ;;  %v903_v33 = vmax.f32 %v898_v40, %v899_v2  ;;  %v895_v35 = vadd.f32 %v885_v50, %v835_v5  ;;  %v887_v41 = vpop.f32.mrf.mxu1  ;;  %v900_v52 = vmax.f32 %v735_v19, %v894_v4 }
 0x162   :  { %v837_v48 = vpop.f32.mrf.mxu0 }
 0x163   :  { %918 = vst [vmem:[#allocation2 + $0x1] sm:$0xff] %v915_v20  ;;  %v913_v3 = vadd.f32 %v2323_v37, %v903_v33  ;;  %v901_v45 = vmax.f32 %v736_v62, %v895_v35  ;;  %v888_v58 = vpop.f32.mrf.mxu1 }
 0x165   :  { %v916_v61 = vmax.f32 %v913_v3, 0.0  ;;  %v904_v46 = vmax.f32 %v900_v52, %v901_v45 }
 0x167   :  { %919 = vst [vmem:[#allocation2 + $0xa] sm:$0xfe] %v916_v61  ;;  %v914_v63 = vadd.f32 %v2323_v37, %v904_v46 }
 0x169   :  { %v917_v49 = vmax.f32 %v914_v63, 0.0 }
 0x16b   :  { %920 = vst [vmem:[#allocation2 + $0x12] sm:$0x1] %v917_v49 }
 0x16c   :  { %2685 = dma.done.wait [#allocation7], 6144 }
 0x16d   :  { %2686 = vsyncadd [#allocation7], 4294961152  ;;  %1090 = vmatprep.mubr.bf16.mxu0 %v3693_v18  ;;  %1213 = vmatprep.mubr.bf16.mxu1 %v3693_v18  ;;  %v3238_v59 = vld [vmem:[#allocation4 + $0xf4] ss:$8 sps:$4 sm:$0xff]   ;;  %v3243_v54 = vld [vmem:[#allocation4 + $0xf0] ss:$8 sps:$4 sm:$0xff]  }
 0x16e   :  { %v3240_v47 = vld [vmem:[#allocation4 + $0x74] ss:$8 sps:$4 sm:$0xff]   ;;  %1058 = vmatprep.subr.bf16.mxu0 %v3238_v59  ;;  %v3245_v60 = vld [vmem:[#allocation4 + $0x70] ss:$8 sps:$4 sm:$0xff]   ;;  %v3248_v51 = vld [vmem:[#allocation4 + $0xe4] ss:$8 sps:$4 sm:$0xff]  }
 0x16f   :  { %1181 = vmatprep.subr.bf16.mxu1 %v3240_v47  ;;  %1059 = vmatpush1.bf16.msra.mxu0 %v3243_v54  ;;  %v3252_v53 = vld [vmem:[#allocation4 + $0x64] ss:$8 sps:$4 sm:$0xff]   ;;  %v3254_v56 = vld [vmem:[#allocation4 + $0xe0] ss:$8 sps:$4 sm:$0xff]   ;;  %v3260_v34 = vld [vmem:[#allocation4 + $0xd4] ss:$8 sps:$4 sm:$0xff]  }
 0x170   :  { %1182 = vmatpush1.bf16.msra.mxu1 %v3245_v60  ;;  %1060 = vmatprep.subr.bf16.mxu0 %v3248_v51  ;;  %v3257_v32 = vld [vmem:[#allocation4 + $0x60] ss:$8 sps:$4 sm:$0xff]   ;;  %v3262_v36 = vld [vmem:[#allocation4 + $0x54] ss:$8 sps:$4 sm:$0xff]   ;;  %v3264_v1 = vld [vmem:[#allocation4 + $0xd0] ss:$8 sps:$4 sm:$0xff]  }
 0x171   :  { %1183 = vmatprep.subr.bf16.mxu1 %v3252_v53  ;;  %v3266_v37 = vld [vmem:[#allocation4 + $0x50] ss:$8 sps:$4 sm:$0xff]   ;;  %v3270_v39 = vld [vmem:[#allocation4 + $0xc4] ss:$8 sps:$4 sm:$0xff]   ;;  %v3276_v38 = vld [vmem:[#allocation4 + $0xc0] ss:$8 sps:$4 sm:$0xff]  }
 0x172   :  { %v3274_v57 = vld [vmem:[#allocation4 + $0x44] ss:$8 sps:$4 sm:$0xff]   ;;  %v3280_v0 = vld [vmem:[#allocation4 + $0x40] ss:$8 sps:$4 sm:$0xff]   ;;  %v3282_v55 = vld [vmem:[#allocation4 + $0xb4] ss:$8 sps:$4 sm:$0xff]  }
 0x173   :  { %1061 = vmatpush1.bf16.msra.mxu0 %v3254_v56  ;;  %v3286_v17 = vld [vmem:[#allocation4 + $0x34] ss:$8 sps:$4 sm:$0xff]   ;;  %v3288_v16 = vld [vmem:[#allocation4 + $0xb0] ss:$8 sps:$4 sm:$0xff]   ;;  %v3294_v43 = vld [vmem:[#allocation4 + $0xa4] ss:$8 sps:$4 sm:$0xff]  }
 0x174   :  { %1184 = vmatpush1.bf16.msra.mxu1 %v3257_v32  ;;  %1062 = vmatprep.subr.bf16.mxu0 %v3260_v34  ;;  %v3290_v40 = vld [vmem:[#allocation4 + $0x30] ss:$8 sps:$4 sm:$0xff]   ;;  %v3298_v44 = vld [vmem:[#allocation4 + $0x24] ss:$8 sps:$4 sm:$0xff]   ;;  %v3302_v2 = vld [vmem:[#allocation4 + $0xa0] ss:$8 sps:$4 sm:$0xff]  }
 0x175   :  { %1185 = vmatprep.subr.bf16.mxu1 %v3262_v36  ;;  %v3304_v4 = vld [vmem:[#allocation4 + $0x20] ss:$8 sps:$4 sm:$0xff]   ;;  %v3308_v5 = vld [vmem:[#allocation4 + $0x94] ss:$8 sps:$4 sm:$0xff]   ;;  %v3312_v19 = vld [vmem:[#allocation4 + $0x90] ss:$8 sps:$4 sm:$0xff]  }
 0x176   :  { %v3310_v50 = vld [vmem:[#allocation4 + $0x14] ss:$8 sps:$4 sm:$0xff]   ;;  %v3316_v42 = vld [vmem:[#allocation4 + $0x10] ss:$8 sps:$4 sm:$0xff]   ;;  %v3320_v62 = vld [vmem:[#allocation4 + $0x84] ss:$8 sps:$4 sm:$0xff]  }
 0x177   :  { %1063 = vmatpush1.bf16.msra.mxu0 %v3264_v1  ;;  %v3322_v20 = vld [vmem:[#allocation4 + $0x4] ss:$8 sps:$4 sm:$0xff]   ;;  %v3324_v33 = vld [vmem:[#allocation4 + $0x80] ss:$8 sps:$4 sm:$0xff]   ;;  %v2593_v45 = vld [vmem:[#allocation4 + $0x174] ss:$8 sps:$4 sm:$0xff]  }
 0x178   :  { %1186 = vmatpush1.bf16.msra.mxu1 %v3266_v37  ;;  %1064 = vmatprep.subr.bf16.mxu0 %v3270_v39  ;;  %v3326_v35 = vld [vmem:[#allocation4] ss:$8 sps:$4 sm:$0xff]   ;;  %v2591_v46 = vld [vmem:[#allocation4 + $0x170] ss:$8 sps:$4 sm:$0xff]   ;;  %v2596_v63 = vld [vmem:[#allocation4 + $0x164] ss:$8 sps:$4 sm:$0xff]  }
 0x179   :  { %1187 = vmatprep.subr.bf16.mxu1 %v3274_v57  ;;  %v931_v41 = vld [vmem:[#allocation2 + $0x1] ss:$2 sm:$0xff]  ;;  %v926_v48 = vld [vmem:[#allocation2] ss:$2 sm:$0xff] }
 0x17a   :  { %v933_v3 = vld [vmem:[#allocation2 + $0x11] ss:$2 sm:$0x1]  ;;  %v928_v52 = vld [vmem:[#allocation2 + $0x10] ss:$2 sm:$0x1] }
 0x17b   :  { %1065 = vmatpush1.bf16.msra.mxu0 %v3276_v38  ;;  %v3332_v58 = vpack.c.bf16 %v933_v3, %v931_v41  ;;  %v929_v61 = vpack.c.bf16 %v928_v52, %v926_v48  ;;  %v2594_v49 = vld [vmem:[#allocation4 + $0x160] ss:$8 sps:$4 sm:$0xff]   ;;  %v2599_v41 = vld [vmem:[#allocation4 + $0x154] ss:$8 sps:$4 sm:$0xff]   ;;  %v2602_v48 = vld [vmem:[#allocation4 + $0x144] ss:$8 sps:$4 sm:$0xff]  }
 0x17c   :  { %1188 = vmatpush1.bf16.msra.mxu1 %v3280_v0  ;;  %1066 = vmatprep.subr.bf16.mxu0 %v3282_v55  ;;  %v2603_v3 = vld [vmem:[#allocation4 + $0x130] ss:$8 sps:$4 sm:$0xff]   ;;  %v2612_v52 = vld [vmem:[#allocation4 + $0x100] ss:$8 sps:$4 sm:$0xff]  }
 0x17d   :  { %1189 = vmatprep.subr.bf16.mxu1 %v3286_v17 }
 0x17f   :  { %1067 = vmatpush1.bf16.msra.mxu0 %v3288_v16 }
 0x180   :  { %1190 = vmatpush1.bf16.msra.mxu1 %v3290_v40  ;;  %1068 = vmatprep.subr.bf16.mxu0 %v3294_v43 }
 0x181   :  { %1191 = vmatprep.subr.bf16.mxu1 %v3298_v44 }
 0x183   :  { %1069 = vmatpush1.bf16.msra.mxu0 %v3302_v2 }
 0x184   :  { %1192 = vmatpush1.bf16.msra.mxu1 %v3304_v4  ;;  %1070 = vmatprep.subr.bf16.mxu0 %v3308_v5 }
 0x185   :  { %1193 = vmatprep.subr.bf16.mxu1 %v3310_v50 }
 0x187   :  { %1071 = vmatpush1.bf16.msra.mxu0 %v3312_v19 }
 0x188   :  { %1194 = vmatpush1.bf16.msra.mxu1 %v3316_v42  ;;  %1072 = vmatprep.subr.bf16.mxu0 %v3320_v62 }
 0x189   :  { %1195 = vmatprep.subr.bf16.mxu1 %v3322_v20 }
 0x18b   :  { %1073 = vmatpush1.bf16.msra.mxu0 %v3324_v33 }
 0x18c   :  { %1196 = vmatpush1.bf16.msra.mxu1 %v3326_v35  ;;  %1321 = vmatprep.subr.bf16.mxu0 %v2593_v45 }
 0x18d   :  { %1368 = vmatprep.subr.bf16.mxu1 %v3238_v59  ;;  %v2597_v59 = vld [vmem:[#allocation4 + $0x150] ss:$8 sps:$4 sm:$0xff]  }
 0x18e   :  { %1091 = vmatmul.mubr.bf16.vlgmr.msra.gmra.mxu0 %v3332_v58 }
 0x18f   :  { %1214 = vmatmul.mubr.bf16.vlgmr.msra.gmra.mxu1 %v929_v61  ;;  %1322 = vmatpush1.bf16.msra.mxu0 %v2591_v46  ;;  %v938_v61 = vld [vmem:[#allocation2 + $0x12] ss:$2 sm:$0x1] }
 0x190   :  { %1369 = vmatpush1.bf16.msra.mxu1 %v3243_v54  ;;  %1323 = vmatprep.subr.bf16.mxu0 %v2596_v63  ;;  %v2600_v54 = vld [vmem:[#allocation4 + $0x140] ss:$8 sps:$4 sm:$0xff]  }
 0x191   :  { %1370 = vmatprep.subr.bf16.mxu1 %v3248_v51  ;;  %1353 = vmatprep.mubr.bf16.mxu0 %v3693_v18  ;;  %v2605_v51 = vld [vmem:[#allocation4 + $0x134] ss:$8 sps:$4 sm:$0xff]  }
 0x192   :  { %1400 = vmatprep.mubr.bf16.mxu1 %v3693_v18 }
 0x193   :  { %1324 = vmatpush1.bf16.msra.mxu0 %v2594_v49 }
 0x194   :  { %1371 = vmatpush1.bf16.msra.mxu1 %v3254_v56  ;;  %1325 = vmatprep.subr.bf16.mxu0 %v2599_v41  ;;  %v2608_v56 = vld [vmem:[#allocation4 + $0x124] ss:$8 sps:$4 sm:$0xff]  }
 0x195   :  { %1372 = vmatprep.subr.bf16.mxu1 %v3260_v34  ;;  %v2606_v34 = vld [vmem:[#allocation4 + $0x120] ss:$8 sps:$4 sm:$0xff]  }
 0x197   :  { %1326 = vmatpush1.bf16.msra.mxu0 %v2597_v59 }
 0x198   :  { %1373 = vmatpush1.bf16.msra.mxu1 %v3264_v1  ;;  %1327 = vmatprep.subr.bf16.mxu0 %v2602_v48  ;;  %v2611_v1 = vld [vmem:[#allocation4 + $0x114] ss:$8 sps:$4 sm:$0xff]  }
 0x199   :  { %1374 = vmatprep.subr.bf16.mxu1 %v3270_v39  ;;  %v2609_v39 = vld [vmem:[#allocation4 + $0x110] ss:$8 sps:$4 sm:$0xff]  }
 0x19b   :  { %1328 = vmatpush1.bf16.msra.mxu0 %v2600_v54 }
 0x19c   :  { %1375 = vmatpush1.bf16.msra.mxu1 %v3276_v38  ;;  %1329 = vmatprep.subr.bf16.mxu0 %v2605_v51  ;;  %v2614_v38 = vld [vmem:[#allocation4 + $0x104] ss:$8 sps:$4 sm:$0xff]  }
 0x19d   :  { %1376 = vmatprep.subr.bf16.mxu1 %v3282_v55  ;;  %v936_v55 = vld [vmem:[#allocation2 + $0x2] ss:$2 sm:$0xff] }
 0x19f   :  { %1330 = vmatpush1.bf16.msra.mxu0 %v2603_v3 }
 0x1a0   :  { %1377 = vmatpush1.bf16.msra.mxu1 %v3288_v16  ;;  %1331 = vmatprep.subr.bf16.mxu0 %v2608_v56  ;;  %v939_v16 = vpack.c.bf16 %v938_v61, %v936_v55 }
 0x1a1   :  { %1378 = vmatprep.subr.bf16.mxu1 %v3294_v43 }
 0x1a3   :  { %1332 = vmatpush1.bf16.msra.mxu0 %v2606_v34 }
 0x1a4   :  { %1379 = vmatpush1.bf16.msra.mxu1 %v3302_v2  ;;  %1333 = vmatprep.subr.bf16.mxu0 %v2611_v1 }
 0x1a5   :  { %1380 = vmatprep.subr.bf16.mxu1 %v3308_v5 }
 0x1a7   :  { %1334 = vmatpush1.bf16.msra.mxu0 %v2609_v39 }
 0x1a8   :  { %1381 = vmatpush1.bf16.msra.mxu1 %v3312_v19  ;;  %1335 = vmatprep.subr.bf16.mxu0 %v2614_v38 }
 0x1a9   :  { %1382 = vmatprep.subr.bf16.mxu1 %v3320_v62 }
 0x1ab   :  { %1336 = vmatpush1.bf16.msra.mxu0 %v2612_v52 }
 0x1ac   :  { %1383 = vmatpush1.bf16.msra.mxu1 %v3324_v33  ;;  %1411 = vmatprep.subr.bf16.mxu0 %v3240_v47  ;;  %v941_v47 = vld [vmem:[#allocation2 + $0x3] ss:$2 sm:$0xff] }
 0x1ad   :  { %1454 = vmatprep.subr.bf16.mxu1 %v2593_v45 }
 0x1ae   :  { %1354 = vmatmul.mubr.bf16.vlgmr.msra.gmra.mxu0 %v939_v16 }
 0x1af   :  { %1401 = vmatmul.mubr.bf16.vlgmr.msra.gmra.mxu1 %v939_v16  ;;  %1412 = vmatpush1.bf16.msra.mxu0 %v3245_v60  ;;  %v943_v60 = vld [vmem:[#allocation2 + $0x13] ss:$2 sm:$0x1]  ;;  %v2372_v16 = vld [vmem:[%s3628_s3] ss:$0 sm:$0xff] }
 0x1b0   :  { %1455 = vmatpush1.bf16.msra.mxu1 %v2591_v46  ;;  %1413 = vmatprep.subr.bf16.mxu0 %v3252_v53  ;;  %v944_v53 = vpack.c.bf16 %v943_v60, %v941_v47 }
 0x1b1   :  { %1456 = vmatprep.subr.bf16.mxu1 %v2596_v63  ;;  %1443 = vmatprep.mubr.bf16.mxu0 %v3693_v18 }
 0x1b2   :  { %1486 = vmatprep.mubr.bf16.mxu1 %v3693_v18 }
 0x1b3   :  { %1414 = vmatpush1.bf16.msra.mxu0 %v3257_v32 }
 0x1b4   :  { %1457 = vmatpush1.bf16.msra.mxu1 %v2594_v49  ;;  %1415 = vmatprep.subr.bf16.mxu0 %v3262_v36 }
 0x1b5   :  { %1458 = vmatprep.subr.bf16.mxu1 %v2599_v41 }
 0x1b7   :  { %1416 = vmatpush1.bf16.msra.mxu0 %v3266_v37 }
 0x1b8   :  { %1459 = vmatpush1.bf16.msra.mxu1 %v2597_v59  ;;  %1417 = vmatprep.subr.bf16.mxu0 %v3274_v57 }
 0x1b9   :  { %1460 = vmatprep.subr.bf16.mxu1 %v2602_v48 }
 0x1bb   :  { %1418 = vmatpush1.bf16.msra.mxu0 %v3280_v0 }
 0x1bc   :  { %1461 = vmatpush1.bf16.msra.mxu1 %v2600_v54  ;;  %1419 = vmatprep.subr.bf16.mxu0 %v3286_v17 }
 0x1bd   :  { %1462 = vmatprep.subr.bf16.mxu1 %v2605_v51 }
 0x1bf   :  { %1420 = vmatpush1.bf16.msra.mxu0 %v3290_v40 }
 0x1c0   :  { %1463 = vmatpush1.bf16.msra.mxu1 %v2603_v3  ;;  %1421 = vmatprep.subr.bf16.mxu0 %v3298_v44 }
 0x1c1   :  { %1464 = vmatprep.subr.bf16.mxu1 %v2608_v56 }
 0x1c3   :  { %1422 = vmatpush1.bf16.msra.mxu0 %v3304_v4 }
 0x1c4   :  { %1465 = vmatpush1.bf16.msra.mxu1 %v2606_v34  ;;  %1423 = vmatprep.subr.bf16.mxu0 %v3310_v50 }
 0x1c5   :  { %1466 = vmatprep.subr.bf16.mxu1 %v2611_v1 }
 0x1c7   :  { %1424 = vmatpush1.bf16.msra.mxu0 %v3316_v42 }
 0x1c8   :  { %1467 = vmatpush1.bf16.msra.mxu1 %v2609_v39  ;;  %1425 = vmatprep.subr.bf16.mxu0 %v3322_v20 }
 0x1c9   :  { %1468 = vmatprep.subr.bf16.mxu1 %v2614_v38 }
 0x1cb   :  { %1426 = vmatpush1.bf16.msra.mxu0 %v3326_v35 }
 0x1cc   :  { %1469 = vmatpush1.bf16.msra.mxu1 %v2612_v52 }
 0x1ce   :  { %1444 = vmatmul.mubr.bf16.vlgmr.msra.gmra.mxu0 %v3332_v58 }
 0x1cf   :  { %1487 = vmatmul.mubr.bf16.vlgmr.msra.gmra.mxu1 %v944_v53 }
 0x24e   :  { %v1092_v32 = vpop.f32.mrf.mxu0 }
 0x24f   :  { %v1215_v36 = vpop.f32.mrf.mxu1 }
 0x250   :  { %v1094_v37 = vpop.f32.mrf.mxu0  ;;  %v1216_v46 = vadd.f32 %v1215_v36, %v1092_v32 }
 0x251   :  { %v1217_v57 = vpop.f32.mrf.mxu1 }
 0x252   :  { %v1096_v0 = vpop.f32.mrf.mxu0  ;;  %v1218_v63 = vadd.f32 %v1217_v57, %v1094_v37 }
 0x253   :  { %v1219_v17 = vpop.f32.mrf.mxu1 }
 0x254   :  { %v1098_v40 = vpop.f32.mrf.mxu0  ;;  %v1220_v34 = vadd.f32 %v1219_v17, %v1096_v0 }
 0x255   :  { %v1221_v43 = vpop.f32.mrf.mxu1 }
 0x256   :  { %v1222_v1 = vadd.f32 %v1221_v43, %v1098_v40  ;;  %v3379_v43 = vcombine.high %v2910_v30, %v2915_v31 }
 0x26e   :  { %v1355_v44 = vpop.f32.mrf.mxu0 }
 0x26f   :  { %v1402_v2 = vpop.f32.mrf.mxu1  ;;  %v1364_v54 = vadd.f32 %v1355_v44, %v1216_v46 }
 0x270   :  { %v1357_v4 = vpop.f32.mrf.mxu0 }
 0x271   :  { %v1404_v5 = vpop.f32.mrf.mxu1  ;;  %v1365_v51 = vadd.f32 %v1357_v4, %v1218_v63  ;;  %v3383_v4 = vcombine.high %v2830_v14, %v2835_v15 }
 0x272   :  { %v1359_v50 = vpop.f32.mrf.mxu0 }
 0x273   :  { %v1406_v19 = vpop.f32.mrf.mxu1  ;;  %v1366_v60 = vadd.f32 %v1359_v50, %v1220_v34  ;;  %v3391_v50 = vcombine.low %v2830_v14, %v2835_v15 }
 0x274   :  { %v1361_v42 = vpop.f32.mrf.mxu0 }
 0x275   :  { %v1408_v62 = vpop.f32.mrf.mxu1  ;;  %v1367_v53 = vadd.f32 %v1361_v42, %v1222_v1 }
 0x28e   :  { %v1445_v20 = vpop.f32.mrf.mxu0 }
 0x28f   :  { %v1488_v33 = vpop.f32.mrf.mxu1  ;;  %v1446_v35 = vadd.f32 %v1445_v20, %v1402_v2 }
 0x290   :  { %v1447_v45 = vpop.f32.mrf.mxu0 }
 0x291   :  { %v1490_v58 = vpop.f32.mrf.mxu1  ;;  %v1497_v49 = vadd.f32 %v1488_v33, %v1446_v35  ;;  %v1448_v41 = vadd.f32 %v1447_v45, %v1404_v5  ;;  %v3387_v5 = vcombine.low %v2910_v30, %v2915_v31 }
 0x292   :  { %v1449_v59 = vpop.f32.mrf.mxu0 }
 0x293   :  { %v1492_v48 = vpop.f32.mrf.mxu1  ;;  %v1498_v3 = vadd.f32 %v1490_v58, %v1448_v41  ;;  %v1450_v56 = vadd.f32 %v1449_v59, %v1406_v19  ;;  %v1501_v38 = vmax.f32 %v1364_v54, %v1497_v49 }
 0x294   :  { %v1451_v39 = vpop.f32.mrf.mxu0 }
 0x295   :  { %v1502_v52 = vmax.f32 %v1365_v51, %v1498_v3  ;;  %v1499_v55 = vadd.f32 %v1492_v48, %v1450_v56  ;;  %v1452_v61 = vadd.f32 %v1451_v39, %v1408_v62  ;;  %v1494_v47 = vpop.f32.mrf.mxu1 }
 0x297   :  { %v1505_v32 = vmax.f32 %v1501_v38, %v1502_v52  ;;  %v1500_v36 = vadd.f32 %v1494_v47, %v1452_v61  ;;  %v1503_v57 = vmax.f32 %v1366_v60, %v1499_v55 }
 0x299   :  { %v1514_v37 = vadd.f32 %v2372_v16, %v1505_v32  ;;  %v1504_v44 = vmax.f32 %v1367_v53, %v1500_v36 }
 0x29b   :  { %v1516_v2 = vmax.f32 %v1514_v37, 0.0  ;;  %v1506_v0 = vmax.f32 %v1503_v57, %v1504_v44 }
 0x29d   :  { %1518 = vst [vmem:[#allocation3 + $0x1] ss:$5 sps:$4 sm:$0xef] %v1516_v2   ;;  %v1515_v17 = vadd.f32 %v2372_v16, %v1506_v0 }
 0x29f   :  { %v1517_v40 = vmax.f32 %v1515_v17, 0.0 }
 0x2a1   :  { %1520 = vst [vmem:[#allocation3 + $0xa] sm:$0x1] %v1517_v40 }
 0x2a2   :  { %2687 = dma.done.wait [#allocation7 + $0x1], 6144 }
 0x2a3   :  { %2688 = vsyncadd [#allocation7 + $0x1], 4294961152  ;;  %1679 = vmatprep.mubr.bf16.mxu0 %v3693_v18  ;;  %v3396_v19 = vcombine.high %v2900_v28, %v2905_v29  ;;  %v3400_v42 = vcombine.high %v2820_v12, %v2825_v13  ;;  %1800 = vmatprep.mubr.bf16.mxu1 %v3693_v18  ;;  %v3409_v14 = vcombine.low %v2900_v28, %v2905_v29  ;;  %v3695_v62 = vld [vmem:[#allocation28_spill] sm:$0xff]  ;;  %v3696_v20 = vld [vmem:[#allocation27_spill] sm:$0xff] }
 0x2a4   :  { %1647 = vmatprep.subr.bf16.mxu0 %v3379_v43  ;;  %1768 = vmatprep.subr.bf16.mxu1 %v3383_v4  ;;  %v3413_v15 = vcombine.low %v2820_v12, %v2825_v13  ;;  %v3419_v30 = vcombine.high %v2890_v26, %v2895_v27  ;;  %v3423_v31 = vcombine.high %v2810_v10, %v2815_v11  ;;  %v3699_v45 = vld [vmem:[#allocation26_spill] sm:$0xff]  ;;  %v3700_v58 = vld [vmem:[#allocation25_spill] sm:$0xff]  ;;  %v3703_v48 = vld [vmem:[#allocation24_spill] sm:$0xff] }
 0x2a5   :  { %1648 = vmatpush1.bf16.msra.mxu0 %v3387_v5  ;;  %1769 = vmatpush1.bf16.msra.mxu1 %v3391_v50  ;;  %v3429_v12 = vcombine.low %v2890_v26, %v2895_v27  ;;  %v3433_v13 = vcombine.low %v2810_v10, %v2815_v11  ;;  %v3439_v28 = vcombine.high %v2880_v24, %v2885_v25  ;;  %v3701_v49 = vld [vmem:[#allocation30_spill] sm:$0xff]  ;;  %v3702_v41 = vld [vmem:[#allocation29_spill] sm:$0xff]  ;;  %v3704_v54 = vld [vmem:[#allocation23_spill] sm:$0xff] }
 0x2a6   :  { %1649 = vmatprep.subr.bf16.mxu0 %v3396_v19  ;;  %1770 = vmatprep.subr.bf16.mxu1 %v3400_v42  ;;  %v3443_v29 = vcombine.high %v2800_v8, %v2805_v9  ;;  %v3449_v10 = vcombine.low %v2880_v24, %v2885_v25  ;;  %v3453_v11 = vcombine.low %v2800_v8, %v2805_v9  ;;  %v3694_v24 = vld [vmem:[#allocation33_spill] sm:$0xff]  ;;  %v3706_v38 = vld [vmem:[#allocation48_spill] sm:$0xff]  ;;  %v3707_v47 = vld [vmem:[#allocation47_spill] sm:$0xff] }
 0x2a7   :  { %v3459_v26 = vcombine.high %v2870_v22, %v2875_v23  ;;  %v3463_v27 = vcombine.high %v2790_v6, %v2795_v7  ;;  %v3469_v8 = vcombine.low %v2870_v22, %v2875_v23  ;;  %v3473_v9 = vcombine.low %v2790_v6, %v2795_v7  ;;  %v3697_v22 = vld [vmem:[#allocation32_spill] sm:$0xff]  ;;  %v3698_v23 = vld [vmem:[#allocation31_spill] sm:$0xff]  ;;  %v3705_v39 = vld [vmem:[#allocation49_spill] sm:$0xff] }
 0x2a8   :  { %v3479_v25 = vcombine.high %v3694_v24, %v2865_v21  ;;  %v3483_v33 = vcombine.high %v3696_v20, %v3695_v62  ;;  %v3489_v6 = vcombine.low %v3694_v24, %v2865_v21  ;;  %v3493_v7 = vcombine.low %v3696_v20, %v3695_v62  ;;  %v1526_v34 = vld [vmem:[#allocation3 + $0x1] ss:$2 sm:$0x1f]  ;;  %v1523_v1 = vld [vmem:[#allocation3] ss:$2 sm:$0x1f] }
 0x2a9   :  { %1650 = vmatpush1.bf16.msra.mxu0 %v3409_v14  ;;  %1771 = vmatpush1.bf16.msra.mxu1 %v3413_v15  ;;  %v3499_v35 = vcombine.high %v3698_v23, %v3697_v22  ;;  %v3503_v46 = vcombine.high %v3700_v58, %v3699_v45  ;;  %v3509_v21 = vcombine.low %v3698_v23, %v3697_v22  ;;  %v3708_v60 = vld [vmem:[#allocation46_spill] sm:$0xff]  ;;  %v3709_v36 = vld [vmem:[#allocation45_spill] sm:$0xff]  ;;  %v3710_v37 = vld [vmem:[#allocation44_spill] sm:$0xff] }
 0x2aa   :  { %1651 = vmatprep.subr.bf16.mxu0 %v3419_v30  ;;  %1772 = vmatprep.subr.bf16.mxu1 %v3423_v31  ;;  %v3513_v63 = vcombine.low %v3700_v58, %v3699_v45  ;;  %v3519_v59 = vcombine.high %v3702_v41, %v3701_v49  ;;  %v3523_v51 = vcombine.high %v3704_v54, %v3703_v48  ;;  %v3711_v2 = vld [vmem:[#allocation43_spill] sm:$0xff]  ;;  %v3712_v0 = vld [vmem:[#allocation42_spill] sm:$0xff]  ;;  %v3717_v62 = vld [vmem:[#allocation37_spill] sm:$0xff] }
 0x2ab   :  { %v2373_v3 = vcombine.low %v3702_v41, %v3701_v49  ;;  %v3531_v56 = vcombine.low %v3704_v54, %v3703_v48  ;;  %v2420_v52 = vcombine.high %v3706_v38, %v3705_v39  ;;  %v3537_v55 = vpack.c.bf16 %v1526_v34, %v1526_v34  ;;  %v3719_v22 = vld [vmem:[#allocation35_spill] sm:$0xff]  ;;  %v1529_v45 = vld [vmem:[#allocation3 + $0x2] ss:$2 sm:$0x1f] }
 0x2ac   :  { %v1524_v61 = vpack.c.bf16 %v1523_v1, %v1523_v1  ;;  %v2419_v16 = vcombine.low %v3706_v38, %v3705_v39  ;;  %v2418_v53 = vcombine.high %v3708_v60, %v3707_v47  ;;  %v2417_v32 = vcombine.low %v3708_v60, %v3707_v47 }
 0x2ad   :  { %1652 = vmatpush1.bf16.msra.mxu0 %v3429_v12  ;;  %1773 = vmatpush1.bf16.msra.mxu1 %v3433_v13  ;;  %v2416_v57 = vcombine.high %v3710_v37, %v3709_v36  ;;  %v2415_v44 = vcombine.low %v3710_v37, %v3709_v36  ;;  %v2414_v17 = vcombine.high %v3712_v0, %v3711_v2 }
 0x2ae   :  { %1653 = vmatprep.subr.bf16.mxu0 %v3439_v28  ;;  %1774 = vmatprep.subr.bf16.mxu1 %v3443_v29  ;;  %v2413_v40 = vcombine.low %v3712_v0, %v3711_v2 }
 0x2b1   :  { %1654 = vmatpush1.bf16.msra.mxu0 %v3449_v10  ;;  %1775 = vmatpush1.bf16.msra.mxu1 %v3453_v11 }
 0x2b2   :  { %1655 = vmatprep.subr.bf16.mxu0 %v3459_v26  ;;  %1776 = vmatprep.subr.bf16.mxu1 %v3463_v27 }
 0x2b5   :  { %1656 = vmatpush1.bf16.msra.mxu0 %v3469_v8  ;;  %1777 = vmatpush1.bf16.msra.mxu1 %v3473_v9 }
 0x2b6   :  { %1657 = vmatprep.subr.bf16.mxu0 %v3479_v25  ;;  %1778 = vmatprep.subr.bf16.mxu1 %v3483_v33 }
 0x2b9   :  { %1658 = vmatpush1.bf16.msra.mxu0 %v3489_v6  ;;  %1779 = vmatpush1.bf16.msra.mxu1 %v3493_v7 }
 0x2ba   :  { %1659 = vmatprep.subr.bf16.mxu0 %v3499_v35  ;;  %1780 = vmatprep.subr.bf16.mxu1 %v3503_v46 }
 0x2bd   :  { %1660 = vmatpush1.bf16.msra.mxu0 %v3509_v21  ;;  %1781 = vmatpush1.bf16.msra.mxu1 %v3513_v63 }
 0x2be   :  { %1661 = vmatprep.subr.bf16.mxu0 %v3519_v59  ;;  %1782 = vmatprep.subr.bf16.mxu1 %v3523_v51 }
 0x2c1   :  { %1662 = vmatpush1.bf16.msra.mxu0 %v2373_v3  ;;  %1783 = vmatpush1.bf16.msra.mxu1 %v3531_v56 }
 0x2c2   :  { %1906 = vmatprep.subr.bf16.mxu0 %v2420_v52  ;;  %1949 = vmatprep.subr.bf16.mxu1 %v3379_v43  ;;  %v3713_v43 = vld [vmem:[#allocation41_spill] sm:$0xff] }
 0x2c4   :  { %1680 = vmatmul.mubr.bf16.vlgmr.msra.gmra.mxu0 %v3537_v55  ;;  %1801 = vmatmul.mubr.bf16.vlgmr.msra.gmra.mxu1 %v1524_v61 }
 0x2c5   :  { %1907 = vmatpush1.bf16.msra.mxu0 %v2419_v16  ;;  %1950 = vmatpush1.bf16.msra.mxu1 %v3387_v5  ;;  %v3714_v5 = vld [vmem:[#allocation40_spill] sm:$0xff] }
 0x2c6   :  { %1908 = vmatprep.subr.bf16.mxu0 %v2418_v53  ;;  %1951 = vmatprep.subr.bf16.mxu1 %v3396_v19  ;;  %v2412_v19 = vcombine.high %v3714_v5, %v3713_v43 }
 0x2c7   :  { %1938 = vmatprep.mubr.bf16.mxu0 %v3693_v18  ;;  %1981 = vmatprep.mubr.bf16.mxu1 %v3693_v18 }
 0x2c9   :  { %1909 = vmatpush1.bf16.msra.mxu0 %v2417_v32  ;;  %1952 = vmatpush1.bf16.msra.mxu1 %v3409_v14  ;;  %v2411_v14 = vcombine.low %v3714_v5, %v3713_v43 }
 0x2ca   :  { %1910 = vmatprep.subr.bf16.mxu0 %v2416_v57  ;;  %1953 = vmatprep.subr.bf16.mxu1 %v3419_v30  ;;  %v3715_v30 = vld [vmem:[#allocation39_spill] sm:$0xff] }
 0x2cd   :  { %1911 = vmatpush1.bf16.msra.mxu0 %v2415_v44  ;;  %1954 = vmatpush1.bf16.msra.mxu1 %v3429_v12  ;;  %v3716_v12 = vld [vmem:[#allocation38_spill] sm:$0xff] }
 0x2ce   :  { %1912 = vmatprep.subr.bf16.mxu0 %v2414_v17  ;;  %1955 = vmatprep.subr.bf16.mxu1 %v3439_v28  ;;  %v2410_v24 = vcombine.high %v3716_v12, %v3715_v30  ;;  %v2409_v28 = vcombine.low %v3716_v12, %v3715_v30 }
 0x2d1   :  { %1913 = vmatpush1.bf16.msra.mxu0 %v2413_v40  ;;  %1956 = vmatpush1.bf16.msra.mxu1 %v3449_v10  ;;  %v3718_v10 = vld [vmem:[#allocation36_spill] sm:$0xff] }
 0x2d2   :  { %1914 = vmatprep.subr.bf16.mxu0 %v2412_v19  ;;  %1957 = vmatprep.subr.bf16.mxu1 %v3459_v26  ;;  %v2408_v20 = vcombine.high %v3718_v10, %v3717_v62  ;;  %v2407_v26 = vcombine.low %v3718_v10, %v3717_v62 }
 0x2d5   :  { %1915 = vmatpush1.bf16.msra.mxu0 %v2411_v14  ;;  %1958 = vmatpush1.bf16.msra.mxu1 %v3469_v8  ;;  %v3720_v8 = vld [vmem:[#allocation34_spill] sm:$0xff] }
 0x2d6   :  { %1916 = vmatprep.subr.bf16.mxu0 %v2410_v24  ;;  %1959 = vmatprep.subr.bf16.mxu1 %v3479_v25  ;;  %v2406_v23 = vcombine.high %v3720_v8, %v3719_v22  ;;  %v2405_v25 = vcombine.low %v3720_v8, %v3719_v22 }
 0x2d9   :  { %1917 = vmatpush1.bf16.msra.mxu0 %v2409_v28  ;;  %1960 = vmatpush1.bf16.msra.mxu1 %v3489_v6  ;;  %v1530_v6 = vpack.c.bf16 %v1529_v45, %v1529_v45 }
 0x2da   :  { %1918 = vmatprep.subr.bf16.mxu0 %v2408_v20  ;;  %1961 = vmatprep.subr.bf16.mxu1 %v3499_v35 }
 0x2dd   :  { %1919 = vmatpush1.bf16.msra.mxu0 %v2407_v26  ;;  %1962 = vmatpush1.bf16.msra.mxu1 %v3509_v21 }
 0x2de   :  { %1920 = vmatprep.subr.bf16.mxu0 %v2406_v23  ;;  %1963 = vmatprep.subr.bf16.mxu1 %v3519_v59 }
 0x2e1   :  { %1921 = vmatpush1.bf16.msra.mxu0 %v2405_v25  ;;  %1964 = vmatpush1.bf16.msra.mxu1 %v2373_v3 }
 0x2e2   :  { %1990 = vmatprep.subr.bf16.mxu0 %v3383_v4  ;;  %2031 = vmatprep.subr.bf16.mxu1 %v2420_v52 }
 0x2e4   :  { %1939 = vmatmul.mubr.bf16.vlgmr.msra.gmra.mxu0 %v1530_v6  ;;  %1982 = vmatmul.mubr.bf16.vlgmr.msra.gmra.mxu1 %v1530_v6 }
 0x2e5   :  { %1991 = vmatpush1.bf16.msra.mxu0 %v3391_v50  ;;  %2032 = vmatpush1.bf16.msra.mxu1 %v2419_v16 }
 0x2e6   :  { %1992 = vmatprep.subr.bf16.mxu0 %v3400_v42  ;;  %2033 = vmatprep.subr.bf16.mxu1 %v2418_v53  ;;  %v2421_v53 = vld [vmem:[%s3629_s4] ss:$0 sm:$0xff] }
 0x2e7   :  { %2022 = vmatprep.mubr.bf16.mxu0 %v3693_v18  ;;  %2063 = vmatprep.mubr.bf16.mxu1 %v3693_v18  ;;  %v1532_v18 = vld [vmem:[#allocation3 + $0x3] ss:$2 sm:$0x1f] }
 0x2e8   :  { %v1533_v4 = vpack.c.bf16 %v1532_v18, %v1532_v18 }
 0x2e9   :  { %1993 = vmatpush1.bf16.msra.mxu0 %v3413_v15  ;;  %2034 = vmatpush1.bf16.msra.mxu1 %v2417_v32 }
 0x2ea   :  { %1994 = vmatprep.subr.bf16.mxu0 %v3423_v31  ;;  %2035 = vmatprep.subr.bf16.mxu1 %v2416_v57 }
 0x2ed   :  { %1995 = vmatpush1.bf16.msra.mxu0 %v3433_v13  ;;  %2036 = vmatpush1.bf16.msra.mxu1 %v2415_v44 }
 0x2ee   :  { %1996 = vmatprep.subr.bf16.mxu0 %v3443_v29  ;;  %2037 = vmatprep.subr.bf16.mxu1 %v2414_v17 }
 0x2f1   :  { %1997 = vmatpush1.bf16.msra.mxu0 %v3453_v11  ;;  %2038 = vmatpush1.bf16.msra.mxu1 %v2413_v40 }
 0x2f2   :  { %1998 = vmatprep.subr.bf16.mxu0 %v3463_v27  ;;  %2039 = vmatprep.subr.bf16.mxu1 %v2412_v19 }
 0x2f5   :  { %1999 = vmatpush1.bf16.msra.mxu0 %v3473_v9  ;;  %2040 = vmatpush1.bf16.msra.mxu1 %v2411_v14 }
 0x2f6   :  { %2000 = vmatprep.subr.bf16.mxu0 %v3483_v33  ;;  %2041 = vmatprep.subr.bf16.mxu1 %v2410_v24 }
 0x2f9   :  { %2001 = vmatpush1.bf16.msra.mxu0 %v3493_v7  ;;  %2042 = vmatpush1.bf16.msra.mxu1 %v2409_v28 }
 0x2fa   :  { %2002 = vmatprep.subr.bf16.mxu0 %v3503_v46  ;;  %2043 = vmatprep.subr.bf16.mxu1 %v2408_v20 }
 0x2fd   :  { %2003 = vmatpush1.bf16.msra.mxu0 %v3513_v63  ;;  %2044 = vmatpush1.bf16.msra.mxu1 %v2407_v26 }
 0x2fe   :  { %2004 = vmatprep.subr.bf16.mxu0 %v3523_v51  ;;  %2045 = vmatprep.subr.bf16.mxu1 %v2406_v23 }
 0x301   :  { %2005 = vmatpush1.bf16.msra.mxu0 %v3531_v56  ;;  %2046 = vmatpush1.bf16.msra.mxu1 %v2405_v25 }
 0x304   :  { %2023 = vmatmul.mubr.bf16.vlgmr.msra.gmra.mxu0 %v3537_v55  ;;  %2064 = vmatmul.mubr.bf16.vlgmr.msra.gmra.mxu1 %v1533_v4 }
 0x384   :  { %v1681_v50 = vpop.f32.mrf.mxu0  ;;  %v1802_v42 = vpop.f32.mrf.mxu1 }
 0x385   :  { %v1803_v15 = vadd.f32 %v1802_v42, %v1681_v50 }
 0x386   :  { %v1683_v31 = vpop.f32.mrf.mxu0  ;;  %v1804_v13 = vpop.f32.mrf.mxu1 }
 0x387   :  { %v1805_v29 = vadd.f32 %v1804_v13, %v1683_v31 }
 0x388   :  { %v1685_v11 = vpop.f32.mrf.mxu0  ;;  %v1806_v27 = vpop.f32.mrf.mxu1 }
 0x38a   :  { %v1686_v9 = vpop.f32.mrf.mxu0  ;;  %v1807_v33 = vpop.f32.mrf.mxu1 }
 0x3a4   :  { %v1940_v7 = vpop.f32.mrf.mxu0  ;;  %v1983_v35 = vpop.f32.mrf.mxu1 }
 0x3a5   :  { %v1947_v38 = vadd.f32 %v1940_v7, %v1803_v15 }
 0x3a6   :  { %v1942_v58 = vpop.f32.mrf.mxu0  ;;  %v1985_v46 = vpop.f32.mrf.mxu1 }
 0x3a7   :  { %v1948_v52 = vadd.f32 %v1942_v58, %v1805_v29 }
 0x3a8   :  { %v1944_v21 = vpop.f32.mrf.mxu0  ;;  %v1987_v63 = vpop.f32.mrf.mxu1 }
 0x3aa   :  { %v1945_v49 = vpop.f32.mrf.mxu0  ;;  %v1988_v41 = vpop.f32.mrf.mxu1 }
 0x3c4   :  { %v2024_v59 = vpop.f32.mrf.mxu0  ;;  %v2065_v48 = vpop.f32.mrf.mxu1 }
 0x3c5   :  { %v2025_v54 = vadd.f32 %v2024_v59, %v1983_v35 }
 0x3c6   :  { %v2026_v51 = vpop.f32.mrf.mxu0  ;;  %v2067_v3 = vpop.f32.mrf.mxu1 }
 0x3c7   :  { %v2072_v56 = vadd.f32 %v2065_v48, %v2025_v54  ;;  %v2027_v34 = vadd.f32 %v2026_v51, %v1985_v46 }
 0x3c8   :  { %v2028_v1 = vpop.f32.mrf.mxu0  ;;  %v2069_v39 = vpop.f32.mrf.mxu1 }
 0x3c9   :  { %v2073_v55 = vadd.f32 %v2067_v3, %v2027_v34  ;;  %v2074_v47 = vmax.f32 %v1947_v38, %v2072_v56 }
 0x3ca   :  { %v2029_v61 = vpop.f32.mrf.mxu0  ;;  %v2070_v16 = vpop.f32.mrf.mxu1 }
 0x3cb   :  { %v2075_v60 = vmax.f32 %v1948_v52, %v2073_v55 }
 0x3cd   :  { %v2076_v32 = vmax.f32 %v2074_v47, %v2075_v60 }
 0x3cf   :  { %v2084_v36 = vadd.f32 %v2421_v53, %v2076_v32 }
 0x3d1   :  { %v2085_v37 = vmax.f32 %v2084_v36, 0.0 }
 0x3d2   :  { %2689 = dma.done.wait [#allocation7 + $0x2], 1024 }
 0x3d3   :  { %2690 = vsyncadd [#allocation7 + $0x2], 4294966272  ;;  %v3721_v57 = vmov 0.0   ;;  %vm2699_vm0 = vmmov 0   ;;  %v2615_v44 = vld [vmem:[#allocation6 + $0x38] sm:$0xff]   ;;  %v2616_v2 = vld [vmem:[#allocation6 + $0x30] sm:$0xff]  }
 0x3d4   :  { %2443 = vmatprep.subr.bf16.mxu0 %v3721_v57  ;;  %2459 = vmatprep.mubr.msk.bf16.mxu0 %vm2699_vm0, %v3721_v57  ;;  %v2617_v0 = vld [vmem:[#allocation6 + $0x28] sm:$0xff]   ;;  %v2618_v17 = vld [vmem:[#allocation6 + $0x20] sm:$0xff]   ;;  %v2619_v40 = vld [vmem:[#allocation6 + $0x18] sm:$0xff]   ;;  %v2092_v43 = vrot.slane %v2085_v37, 1  ;;  %vm2098_vm1 = vcmask 1040384   ;;  %s2700_s19 = smov [#allocation11]  }
 0x3d5   :  { %2444 = vmatpush3.bf16.msra.mxu0 %v2615_v44  ;;  %v2620_v5 = vld [vmem:[#allocation6 + $0x10] sm:$0xff]   ;;  %v2621_v14 = vld [vmem:[#allocation6 + $0x8] sm:$0xff]   ;;  %v2622_v12 = vld [vmem:[#allocation6] sm:$0xff]   ;;  %s2219_s20 = sshll.u32 %s2700_s19, 4  ;;  %s2220_s20 = int_to_ptr.vmem [resolvable:$true] %s2219_s20 }
 0x3d6   :  { %2445 = vmatprep.subr.bf16.mxu0 %v3721_v57  ;;  %v2094_v19 = vadd.f32 %v2092_v43, %v2085_v37  ;;  %v2422_v62 = vld [vmem:[%s3630_s5] ss:$0 sm:$0xff]  ;;  %s2663_s21 = scalar_lea.vmem %s2220_s20, 32  ;;  %p2668_p11 = scmp.lt.s32.totalorder %s2220_s20, %s2220_s20 }
 0x3d7   :  { %p2664_p10 = scmp.ne.s32.totalorder %s2220_s20, %s2663_s21  ;;  %p2669_p12 = scmp.lt.s32.totalorder %s2663_s21, %s2663_s21 }
 0x3d8   :  { %v2096_v30 = vrot.slane %v2094_v19, 2 }
 0x3d9   :  { %2446 = vmatpush3.bf16.msra.mxu0 %v2616_v2  ;;  %p2670_p13 = por %p2669_p12, %p2668_p11 }
 0x3da   :  { %2447 = vmatprep.subr.bf16.mxu0 %v3721_v57  ;;  %v2099_v24 = vsel %vm2098_vm1, %v2094_v19, %v2096_v30 }
 0x3db   :  { %v2100_v28 = vpack.c.bf16 %v2099_v24, %v2099_v24  ;;  %p2671_p0 = pnand %p2670_p13, %p2664_p10 }
 0x3dd   :  { %2448 = vmatpush3.bf16.msra.mxu0 %v2617_v0 }
 0x3de   :  { %2449 = vmatprep.subr.bf16.mxu0 %v3721_v57 }
 0x3e1   :  { %2450 = vmatpush3.bf16.msra.mxu0 %v2618_v17 }
 0x3e2   :  { %2451 = vmatprep.subr.bf16.mxu0 %v3721_v57 }
 0x3e5   :  { %2452 = vmatpush3.bf16.msra.mxu0 %v2619_v40 }
 0x3e6   :  { %2453 = vmatprep.subr.bf16.mxu0 %v3721_v57 }
 0x3e9   :  { %2454 = vmatpush3.bf16.msra.mxu0 %v2620_v5 }
 0x3ea   :  { %2455 = vmatprep.subr.bf16.mxu0 %v3721_v57 }
 0x3ed   :  { %2456 = vmatpush3.bf16.msra.mxu0 %v2621_v14 }
 0x3ee   :  { %2457 = vmatprep.subr.bf16.mxu0 %v3721_v57 }
 0x3f1   :  { %2458 = vmatpush3.bf16.msra.mxu0 %v2622_v12 }
 0x3f4   :  { %2460 = vmatmul.mubr.bf16.vlgmr.msra.gmra.mxu0 %v2100_v28 }
 0x4b4   :  { %v2206_v10 = vpop.f32.mrf.mxu0 }
 0x4b5   :  { %v2207_v20 = vadd.f32 %v2422_v62, %v2206_v10 }
 0x4b6   :  { %v2461_v26 = vpop.f32.mrf.mxu0 }
 0x4b7   :  { %2212 = vst [vmem:[#allocation11] sm:$0x3] %v2207_v20 }
 0x4b8   :  { %v2209_v22 = vpop.f32.mrf.mxu0 }
 0x4b9   :  { %2674 = shalt.err (!%p2671_p0)
}
 0x4ba   :  { %2222 = dma.vmem_to_hbm [thread:$0]  %s2220_s20, 32, %s3634_s9, [#allocation10]   ;;  %v2462_v8 = vpop.f32.mrf.mxu0 }
 0x4bb   :  { %2691 = dma.done.wait [#allocation10], 32  }
 0x4bc   :  { %2692 = vsyncadd [#allocation10], 4294967264 }
 0x4bd   :  { %2226 = vsyncpa [#allocation9], 1 }
 0x4be   :  { %2227 = vsyncpa [#allocation10], 1 }
 0x4bf   :  { %2228 = vsyncmov [#allocation7] }
 0x4c2   :  { %s2229_s5 = vpop.sfrf %2228 }
 0x4c3   :  { %p2431_p1 = scmp.ne.s32.totalorder %s2229_s5, 0 }
 0x4c5   :  { %2233 = shalt.err (%p2431_p1)  }
 0x4c6   :  { %2235 = vsyncmov [#allocation7 + $0x1] }
 0x4c9   :  { %s2236_s23 = vpop.sfrf %2235 }
 0x4ca   :  { %p2432_p2 = scmp.ne.s32.totalorder %s2236_s23, 0 }
 0x4cc   :  { %2240 = shalt.err (%p2432_p2)  }
 0x4cd   :  { %2242 = vsyncmov [#allocation7 + $0x2] }
 0x4d0   :  { %s2243_s24 = vpop.sfrf %2242 }
 0x4d1   :  { %p2433_p3 = scmp.ne.s32.totalorder %s2243_s24, 0 }
 0x4d3   :  { %2247 = shalt.err (%p2433_p3)  }

</bundles_post_ra>
